<compile_context>
chip_gen: v5e
topology: v5e:2x2
jax: 0.10.0
libtpu: 0.0.40
codegen_flags: <defaults>
</compile_context>

<pallas_src>
import functools

import numpy as np
import jax
import jax.numpy as jnp
from jax import lax
from jax.experimental import pallas as pl
from jax.experimental.pallas import tpu as pltpu

_INV_SQRT2 = 0.7071067811865476


def _interp_matrix(n_in, n_out):
  """Bilinear interpolation matrix (align_corners=True), shape (n_out, n_in)."""
  A = np.zeros((n_out, n_in), np.float32)
  scale = (n_in - 1) / (n_out - 1) if n_out > 1 else 0.0
  for o in range(n_out):
    s = o * scale
    i0 = min(int(np.floor(s)), n_in - 1)
    i1 = min(i0 + 1, n_in - 1)
    f = s - i0
    A[o, i0] += 1.0 - f
    A[o, i1] += f
  return A


def _border_masks(H, W):
  """(8, H*W) f32 validity masks for the 8 non-center 3x3 taps (row-major)."""
  HW = H * W
  hh, ww = np.meshgrid(np.arange(H), np.arange(W), indexing="ij")
  hh = hh.reshape(HW)
  ww = ww.reshape(HW)
  rows = []
  for dh in range(3):
    for dw in range(3):
      if dh == 1 and dw == 1:
        continue
      m = ((hh + dh - 1 >= 0) & (hh + dh - 1 < H) &
           (ww + dw - 1 >= 0) & (ww + dw - 1 < W))
      rows.append(m.astype(np.float32))
  return np.stack(rows, axis=0)


def _up_kernel(x_ref, skip_ref, t_ref, upT_ref, mask_ref,
               w1_ref, g1_ref, b1_ref,
               w2_ref, g2_ref, b2_ref,
               w3_ref, g3_ref, b3_ref,
               w4_ref, g4_ref, b4_ref,
               wl_ref, bl_ref,
               o_ref,
               *, H, W):
  f32 = jnp.float32
  HW = H * W

  def erf(z):
    # Abramowitz & Stegun 7.1.26 (|abs err| < 1.5e-7); exact division is kept
    # (instead of approx reciprocal) to preserve the 5e-3 match against
    # PyTorch's exact erf-based GELU.
    a1, a2, a3, a4, a5 = (0.254829592, -0.284496736, 1.421413741,
                          -1.453152027, 1.061405429)
    p = 0.3275911
    za = jnp.abs(z)
    tt = 1.0 / (1.0 + p * za)
    poly = ((((a5 * tt + a4) * tt + a3) * tt + a2) * tt + a1) * tt
    y = 1.0 - poly * jnp.exp(-za * za)
    return jnp.where(z >= 0.0, y, -y)

  def gelu(v):
    return 0.5 * v * (1.0 + erf(v * _INV_SQRT2))

  # --- 3x3 tap shifts + host-precomputed border-validity masks (shared by all
  #     four convs).  Flat layout: p = h*W + w, so tap (dh,dw) reads
  #     flat[p + (dh-1)*W + (dw-1)], implemented as a lane rotation + mask. ---
  masks = mask_ref[...]                       # (8, HW)
  taps = []
  mi = 0
  for dh in range(3):
    for dw in range(3):
      if dh == 1 and dw == 1:
        taps.append((0, None))                # center tap: no shift, no mask
        continue
      off = (dh - 1) * W + (dw - 1)
      shift = (-off) % HW                     # roll(x, s)[p] = x[p - s] => x[p + off]
      taps.append((shift, masks[mi:mi + 1, :]))
      mi += 1

  def conv3x3(h, w2d):
    # h: (cin, HW);  w2d: (cout, 9*cin)  ->  (cout, HW)  [one MXU matmul]
    pieces = []
    for shift, m in taps:
      s = h if shift == 0 else pltpu.roll(h, shift, axis=1)
      if m is not None:
        s = s * m
      pieces.append(s)
    cols = jnp.concatenate(pieces, axis=0)                  # (9*cin, HW)
    return jnp.dot(w2d, cols, preferred_element_type=f32)   # (cout, HW)

  def group_norm1(h, gamma, beta):
    # GroupNorm(num_groups=1): normalize over all of (C, HW), per-channel affine.
    # Single reduction pass: var = E[x^2] - E[x]^2.
    inv_n = 1.0 / float(h.shape[0] * h.shape[1])
    mean = jnp.sum(h) * inv_n
    var = jnp.sum(h * h) * inv_n - mean * mean
    return (h - mean) * lax.rsqrt(var + 1e-5) * gamma + beta

  # --- bilinear upsample x2 (align_corners=True) as ONE matmul ---
  # upT = kron(ah, aw).T : (Hl*Wl, H*W)
  up = jnp.dot(x_ref[0], upT_ref[...], preferred_element_type=f32)  # (Cx, HW)

  # --- concat (torch.cat([skip_x, x], dim=1)) in registers ---
  xc = jnp.concatenate([skip_ref[0], up], axis=0)                   # (Cin, HW)

  # --- DoubleConv #1 (residual) ---
  h = gelu(group_norm1(conv3x3(xc, w1_ref[...]), g1_ref[...], b1_ref[...]))
  h = group_norm1(conv3x3(h, w2_ref[...]), g2_ref[...], b2_ref[...])
  r = gelu(xc + h)

  # --- DoubleConv #2 (in -> in//2 -> out) ---
  h = gelu(group_norm1(conv3x3(r, w3_ref[...]), g3_ref[...], b3_ref[...]))
  h = group_norm1(conv3x3(h, w4_ref[...]), g4_ref[...], b4_ref[...])

  # --- embedding branch: Linear(SiLU(t)) broadcast over spatial dims ---
  tv = t_ref[0]                                   # (1, emb_dim)
  silu = tv * (1.0 / (1.0 + jnp.exp(-tv)))
  e = jnp.sum(wl_ref[...] * silu, axis=1, keepdims=True) + bl_ref[...]  # (Cout, 1)

  o_ref[0] = h + e


def up_forward(x, skip, t, params):
  B, Cx, Hl, Wl = x.shape
  _, Cs, H, W = skip.shape
  Cin = Cx + Cs
  Cmid = Cin // 2
  emb_dim = t.shape[1]
  Cout = params["w4"].shape[0]
  HW = H * W

  ah = _interp_matrix(Hl, H)                       # (H, Hl)
  aw = _interp_matrix(Wl, W)                       # (W, Wl)
  upT = jnp.asarray(np.kron(ah, aw).T)             # (Hl*Wl, H*W)
  masks = jnp.asarray(_border_masks(H, W))         # (8, H*W)

  def taps2d(w):  # OIHW -> (O, 9*I); column block k = kh*3+kw, channels inner
    o, i = w.shape[0], w.shape[1]
    return jnp.transpose(w, (0, 2, 3, 1)).reshape(o, 9 * i)

  w1, w2, w3, w4 = (taps2d(params[k]) for k in ("w1", "w2", "w3", "w4"))
  g1 = params["g1"].reshape(Cin, 1);  b1 = params["b1"].reshape(Cin, 1)
  g2 = params["g2"].reshape(Cin, 1);  b2 = params["b2"].reshape(Cin, 1)
  g3 = params["g3"].reshape(Cmid, 1); b3 = params["b3"].reshape(Cmid, 1)
  g4 = params["g4"].reshape(Cout, 1); b4 = params["b4"].reshape(Cout, 1)
  wl = params["wl"]                                 # (Cout, emb_dim)
  bl = params["bl"].reshape(Cout, 1)

  # Lane-dense spatial layout: H*W on the last (lane) axis.
  xf = x.reshape(B, Cx, Hl * Wl)
  sf = skip.reshape(B, Cs, HW)
  tf = t.reshape(B, 1, emb_dim)

  kernel = functools.partial(_up_kernel, H=H, W=W)

  def full(arr):
    return pl.BlockSpec(arr.shape, lambda b, _n=arr.ndim: (0,) * _n)

  grid_spec = pltpu.PrefetchScalarGridSpec(
      num_scalar_prefetch=0,
      grid=(B,),
      in_specs=[
          pl.BlockSpec((1, Cx, Hl * Wl), lambda b: (b, 0, 0)),
          pl.BlockSpec((1, Cs, HW), lambda b: (b, 0, 0)),
          pl.BlockSpec((1, 1, emb_dim), lambda b: (b, 0, 0)),
          full(upT), full(masks),
          full(w1), full(g1), full(b1),
          full(w2), full(g2), full(b2),
          full(w3), full(g3), full(b3),
          full(w4), full(g4), full(b4),
          full(wl), full(bl),
      ],
      out_specs=pl.BlockSpec((1, Cout, HW), lambda b: (b, 0, 0)),
  )

  out = pl.pallas_call(
      kernel,
      out_shape=jax.ShapeDtypeStruct((B, Cout, HW), jnp.float32),
      grid_spec=grid_spec,
      compiler_params=pltpu.CompilerParams(
          dimension_semantics=("parallel",),      # v7x: shard batch over 2 TCs
          vmem_limit_bytes=32 * 1024 * 1024),
  )(xf, sf, tf, upT, masks,
    w1, g1, b1, w2, g2, b2, w3, g3, b3, w4, g4, b4, wl, bl)

  return out.reshape(B, Cout, H, W)


def init_params(key, in_channels, out_channels, emb_dim):
  mid = in_channels // 2
  ks = jax.random.split(key, 6)
  p = {
      "w1": 0.1 * jax.random.normal(ks[0], (in_channels, in_channels, 3, 3), jnp.float32),
      "w2": 0.1 * jax.random.normal(ks[1], (in_channels, in_channels, 3, 3), jnp.float32),
      "w3": 0.1 * jax.random.normal(ks[2], (mid, in_channels, 3, 3), jnp.float32),
      "w4": 0.1 * jax.random.normal(ks[3], (out_channels, mid, 3, 3), jnp.float32),
      "g1": jnp.ones((in_channels,), jnp.float32), "b1": jnp.zeros((in_channels,), jnp.float32),
      "g2": jnp.ones((in_channels,), jnp.float32), "b2": jnp.zeros((in_channels,), jnp.float32),
      "g3": jnp.ones((mid,), jnp.float32), "b3": jnp.zeros((mid,), jnp.float32),
      "g4": jnp.ones((out_channels,), jnp.float32), "b4": jnp.zeros((out_channels,), jnp.float32),
      "wl": 0.1 * jax.random.normal(ks[4], (out_channels, emb_dim), jnp.float32),
      "bl": 0.1 * jax.random.normal(ks[5], (out_channels,), jnp.float32),
  }
  return p


def ref_forward(x, skip, t, p):
  """Pure-JAX reference (same math) for a correctness check."""
  B, Cx, Hl, Wl = x.shape
  _, Cs, H, W = skip.shape
  ah = jnp.asarray(_interp_matrix(Hl, H))
  awT = jnp.asarray(_interp_matrix(Wl, W)).T
  xw = jnp.einsum("bchw,wW->bchW", x, awT)
  up = jnp.einsum("Hh,bchW->bcHW", ah, xw)
  xc = jnp.concatenate([skip, up], axis=1)

  def conv(h, w):
    return lax.conv_general_dilated(h, w, (1, 1), "SAME",
                                    dimension_numbers=("NCHW", "OIHW", "NCHW"))

  def gn(h, g, b):
    mean = jnp.mean(h, axis=(1, 2, 3), keepdims=True)
    var = jnp.mean((h - mean) ** 2, axis=(1, 2, 3), keepdims=True)
    return (h - mean) * lax.rsqrt(var + 1e-5) * g.reshape(1, -1, 1, 1) + b.reshape(1, -1, 1, 1)

  gelu = lambda v: jax.nn.gelu(v, approximate=False)
  h = gelu(gn(conv(xc, p["w1"]), p["g1"], p["b1"]))
  h = gn(conv(h, p["w2"]), p["g2"], p["b2"])
  r = gelu(xc + h)
  h = gelu(gn(conv(r, p["w3"]), p["g3"], p["b3"]))
  h = gn(conv(h, p["w4"]), p["g4"], p["b4"])
  silu = t * jax.nn.sigmoid(t)
  emb = silu @ p["wl"].T + p["bl"]
  return h + emb[:, :, None, None]


if __name__ == "__main__":
  B, Cx, Cs = 2, 4, 4            # concat -> in_channels = 8
  Hl = Wl = 8                    # low-res input; upsampled to 16x16
  Cout = 4
  emb_dim = 32
  in_channels = Cx + Cs

  key = jax.random.PRNGKey(0)
  kx, ks_, kt, kp = jax.random.split(key, 4)
  x = jax.random.normal(kx, (B, Cx, Hl, Wl), jnp.float32)
  skip = jax.random.normal(ks_, (B, Cs, 2 * Hl, 2 * Wl), jnp.float32)
  t = jax.random.normal(kt, (B, emb_dim), jnp.float32)
  params = init_params(kp, in_channels, Cout, emb_dim)

  out = up_forward(x, skip, t, params)
  out = jax.block_until_ready(out)

  ref = ref_forward(x, skip, t, params)
  np.testing.assert_allclose(np.asarray(out), np.asarray(ref), rtol=5e-3, atol=5e-3)
  print("KERNEL_OK")
</pallas_src>

<mosaic_0001>
module attributes {stable_mosaic.version = 11 : i64} {
  func.func @_up_kernel(%arg0: i32, %arg1: memref<1x4x64xf32, #tpu.memory_space<vmem>>, %arg2: memref<1x4x256xf32, #tpu.memory_space<vmem>>, %arg3: memref<1x1x32xf32, #tpu.memory_space<vmem>>, %arg4: memref<64x256xf32, #tpu.memory_space<vmem>>, %arg5: memref<8x256xf32, #tpu.memory_space<vmem>>, %arg6: memref<8x72xf32, #tpu.memory_space<vmem>>, %arg7: memref<8x1xf32, #tpu.memory_space<vmem>>, %arg8: memref<8x1xf32, #tpu.memory_space<vmem>>, %arg9: memref<8x72xf32, #tpu.memory_space<vmem>>, %arg10: memref<8x1xf32, #tpu.memory_space<vmem>>, %arg11: memref<8x1xf32, #tpu.memory_space<vmem>>, %arg12: memref<4x72xf32, #tpu.memory_space<vmem>>, %arg13: memref<4x1xf32, #tpu.memory_space<vmem>>, %arg14: memref<4x1xf32, #tpu.memory_space<vmem>>, %arg15: memref<4x36xf32, #tpu.memory_space<vmem>>, %arg16: memref<4x1xf32, #tpu.memory_space<vmem>>, %arg17: memref<4x1xf32, #tpu.memory_space<vmem>>, %arg18: memref<4x32xf32, #tpu.memory_space<vmem>>, %arg19: memref<4x1xf32, #tpu.memory_space<vmem>>, %arg20: memref<1x4x256xf32, #tpu.memory_space<vmem>>) attributes {dimension_semantics = [#tpu.dimension_semantics<parallel>], iteration_bounds = array<i64: 2>, scalar_prefetch = 0 : i64, scratch_operands = 0 : i64, tpu.core_type = #tpu.core_type<tc>, window_params = [{transform_indices = @transform_0, window_bounds = array<i64: 1, 4, 64>}, {transform_indices = @transform_1, window_bounds = array<i64: 1, 4, 256>}, {transform_indices = @transform_2, window_bounds = array<i64: 1, 1, 32>}, {pipeline_mode = #tpu.pipeline_mode<synchronous>, transform_indices = @transform_3, window_bounds = array<i64: 64, 256>}, {pipeline_mode = #tpu.pipeline_mode<synchronous>, transform_indices = @transform_4, window_bounds = array<i64: 8, 256>}, {pipeline_mode = #tpu.pipeline_mode<synchronous>, transform_indices = @transform_5, window_bounds = array<i64: 8, 72>}, {pipeline_mode = #tpu.pipeline_mode<synchronous>, transform_indices = @transform_6, window_bounds = array<i64: 8, 1>}, {pipeline_mode = #tpu.pipeline_mode<synchronous>, transform_indices = @transform_7, window_bounds = array<i64: 8, 1>}, {pipeline_mode = #tpu.pipeline_mode<synchronous>, transform_indices = @transform_8, window_bounds = array<i64: 8, 72>}, {pipeline_mode = #tpu.pipeline_mode<synchronous>, transform_indices = @transform_9, window_bounds = array<i64: 8, 1>}, {pipeline_mode = #tpu.pipeline_mode<synchronous>, transform_indices = @transform_10, window_bounds = array<i64: 8, 1>}, {pipeline_mode = #tpu.pipeline_mode<synchronous>, transform_indices = @transform_11, window_bounds = array<i64: 4, 72>}, {pipeline_mode = #tpu.pipeline_mode<synchronous>, transform_indices = @transform_12, window_bounds = array<i64: 4, 1>}, {pipeline_mode = #tpu.pipeline_mode<synchronous>, transform_indices = @transform_13, window_bounds = array<i64: 4, 1>}, {pipeline_mode = #tpu.pipeline_mode<synchronous>, transform_indices = @transform_14, window_bounds = array<i64: 4, 36>}, {pipeline_mode = #tpu.pipeline_mode<synchronous>, transform_indices = @transform_15, window_bounds = array<i64: 4, 1>}, {pipeline_mode = #tpu.pipeline_mode<synchronous>, transform_indices = @transform_16, window_bounds = array<i64: 4, 1>}, {pipeline_mode = #tpu.pipeline_mode<synchronous>, transform_indices = @transform_17, window_bounds = array<i64: 4, 32>}, {pipeline_mode = #tpu.pipeline_mode<synchronous>, transform_indices = @transform_18, window_bounds = array<i64: 4, 1>}, {transform_indices = @transform_19, window_bounds = array<i64: 1, 4, 256>}]} {
    %c0 = arith.constant 0 : index
    %c0_0 = arith.constant 0 : index
    %0 = vector.load %arg5[%c0, %c0_0] : memref<8x256xf32, #tpu.memory_space<vmem>>, vector<8x256xf32>
    %1 = vector.extract_strided_slice %0 {offsets = [0, 0], sizes = [1, 256], strides = [1, 1]} : vector<8x256xf32> to vector<1x256xf32>
    %2 = vector.extract_strided_slice %0 {offsets = [1, 0], sizes = [1, 256], strides = [1, 1]} : vector<8x256xf32> to vector<1x256xf32>
    %3 = vector.extract_strided_slice %0 {offsets = [2, 0], sizes = [1, 256], strides = [1, 1]} : vector<8x256xf32> to vector<1x256xf32>
    %4 = vector.extract_strided_slice %0 {offsets = [3, 0], sizes = [1, 256], strides = [1, 1]} : vector<8x256xf32> to vector<1x256xf32>
    %5 = vector.extract_strided_slice %0 {offsets = [4, 0], sizes = [1, 256], strides = [1, 1]} : vector<8x256xf32> to vector<1x256xf32>
    %6 = vector.extract_strided_slice %0 {offsets = [5, 0], sizes = [1, 256], strides = [1, 1]} : vector<8x256xf32> to vector<1x256xf32>
    %7 = vector.extract_strided_slice %0 {offsets = [6, 0], sizes = [1, 256], strides = [1, 1]} : vector<8x256xf32> to vector<1x256xf32>
    %8 = vector.extract_strided_slice %0 {offsets = [7, 0], sizes = [1, 256], strides = [1, 1]} : vector<8x256xf32> to vector<1x256xf32>
    %c0_1 = arith.constant 0 : index
    %c0_2 = arith.constant 0 : index
    %c0_3 = arith.constant 0 : index
    %9 = vector.load %arg1[%c0_1, %c0_2, %c0_3] : memref<1x4x64xf32, #tpu.memory_space<vmem>>, vector<1x4x64xf32>
    %10 = vector.shape_cast %9 : vector<1x4x64xf32> to vector<4x64xf32>
    %c0_4 = arith.constant 0 : index
    %c0_5 = arith.constant 0 : index
    %11 = vector.load %arg4[%c0_4, %c0_5] : memref<64x256xf32, #tpu.memory_space<vmem>>, vector<64x256xf32>
    %cst = arith.constant dense<0.000000e+00> : vector<4x256xf32>
    %12 = tpu.matmul %10, %11, %cst {dimension_numbers = #tpu.dot_dimension_numbers<[1], [0], [0], [1], [0, 0, 1, 1], [], []>} : vector<4x64xf32>, vector<64x256xf32>, vector<4x256xf32> -> vector<4x256xf32>
    %c0_6 = arith.constant 0 : index
    %c0_7 = arith.constant 0 : index
    %c0_8 = arith.constant 0 : index
    %13 = vector.load %arg2[%c0_6, %c0_7, %c0_8] : memref<1x4x256xf32, #tpu.memory_space<vmem>>, vector<1x4x256xf32>
    %14 = vector.shape_cast %13 : vector<1x4x256xf32> to vector<4x256xf32>
    %15 = tpu.concatenate %14, %12 in 0 : vector<4x256xf32>, vector<4x256xf32> -> vector<8x256xf32>
    %c0_9 = arith.constant 0 : index
    %c0_10 = arith.constant 0 : index
    %16 = vector.load %arg6[%c0_9, %c0_10] : memref<8x72xf32, #tpu.memory_space<vmem>>, vector<8x72xf32>
    %c17_i32 = arith.constant 17 : i32
    %17 = tpu.dynamic_rotate %15 by %c17_i32 dim 1 : vector<8x256xf32>, i32 -> vector<8x256xf32>
    %18 = vector.broadcast %1 : vector<1x256xf32> to vector<8x256xf32>
    %19 = arith.mulf %17, %18 : vector<8x256xf32>
    %c16_i32 = arith.constant 16 : i32
    %20 = tpu.dynamic_rotate %15 by %c16_i32 dim 1 : vector<8x256xf32>, i32 -> vector<8x256xf32>
    %21 = vector.broadcast %2 : vector<1x256xf32> to vector<8x256xf32>
    %22 = arith.mulf %20, %21 : vector<8x256xf32>
    %c15_i32 = arith.constant 15 : i32
    %23 = tpu.dynamic_rotate %15 by %c15_i32 dim 1 : vector<8x256xf32>, i32 -> vector<8x256xf32>
    %24 = vector.broadcast %3 : vector<1x256xf32> to vector<8x256xf32>
    %25 = arith.mulf %23, %24 : vector<8x256xf32>
    %c1_i32 = arith.constant 1 : i32
    %26 = tpu.dynamic_rotate %15 by %c1_i32 dim 1 : vector<8x256xf32>, i32 -> vector<8x256xf32>
    %27 = vector.broadcast %4 : vector<1x256xf32> to vector<8x256xf32>
    %28 = arith.mulf %26, %27 : vector<8x256xf32>
    %c255_i32 = arith.constant 255 : i32
    %29 = tpu.dynamic_rotate %15 by %c255_i32 dim 1 : vector<8x256xf32>, i32 -> vector<8x256xf32>
    %30 = vector.broadcast %5 : vector<1x256xf32> to vector<8x256xf32>
    %31 = arith.mulf %29, %30 : vector<8x256xf32>
    %c241_i32 = arith.constant 241 : i32
    %32 = tpu.dynamic_rotate %15 by %c241_i32 dim 1 : vector<8x256xf32>, i32 -> vector<8x256xf32>
    %33 = vector.broadcast %6 : vector<1x256xf32> to vector<8x256xf32>
    %34 = arith.mulf %32, %33 : vector<8x256xf32>
    %c240_i32 = arith.constant 240 : i32
    %35 = tpu.dynamic_rotate %15 by %c240_i32 dim 1 : vector<8x256xf32>, i32 -> vector<8x256xf32>
    %36 = vector.broadcast %7 : vector<1x256xf32> to vector<8x256xf32>
    %37 = arith.mulf %35, %36 : vector<8x256xf32>
    %c239_i32 = arith.constant 239 : i32
    %38 = tpu.dynamic_rotate %15 by %c239_i32 dim 1 : vector<8x256xf32>, i32 -> vector<8x256xf32>
    %39 = vector.broadcast %8 : vector<1x256xf32> to vector<8x256xf32>
    %40 = arith.mulf %38, %39 : vector<8x256xf32>
    %41 = tpu.concatenate %19, %22, %25, %28, %15, %31, %34, %37, %40 in 0 : vector<8x256xf32>, vector<8x256xf32>, vector<8x256xf32>, vector<8x256xf32>, vector<8x256xf32>, vector<8x256xf32>, vector<8x256xf32>, vector<8x256xf32>, vector<8x256xf32> -> vector<72x256xf32>
    %cst_11 = arith.constant dense<0.000000e+00> : vector<8x256xf32>
    %42 = tpu.matmul %16, %41, %cst_11 {dimension_numbers = #tpu.dot_dimension_numbers<[1], [0], [0], [1], [0, 0, 1, 1], [], []>} : vector<8x72xf32>, vector<72x256xf32>, vector<8x256xf32> -> vector<8x256xf32>
    %c0_12 = arith.constant 0 : index
    %c0_13 = arith.constant 0 : index
    %43 = vector.load %arg7[%c0_12, %c0_13] : memref<8x1xf32, #tpu.memory_space<vmem>>, vector<8x1xf32>
    %c0_14 = arith.constant 0 : index
    %c0_15 = arith.constant 0 : index
    %44 = vector.load %arg8[%c0_14, %c0_15] : memref<8x1xf32, #tpu.memory_space<vmem>>, vector<8x1xf32>
    %45 = vector.shape_cast %42 : vector<8x256xf32> to vector<1x8x256xf32>
    %cst_16 = arith.constant dense<0.000000e+00> : vector<1xf32>
    %46 = vector.multi_reduction <add>, %45, %cst_16 [1, 2] : vector<1x8x256xf32> to vector<1xf32>
    %47 = vector.shape_cast %46 : vector<1xf32> to vector<1x1x1xf32>
    %48 = vector.extract %47[0, 0, 0] : f32 from vector<1x1x1xf32>
    %cst_17 = arith.constant 4.8828125E-4 : f32
    %49 = arith.mulf %48, %cst_17 : f32
    %50 = arith.mulf %42, %42 : vector<8x256xf32>
    %51 = vector.shape_cast %50 : vector<8x256xf32> to vector<1x8x256xf32>
    %cst_18 = arith.constant dense<0.000000e+00> : vector<1xf32>
    %52 = vector.multi_reduction <add>, %51, %cst_18 [1, 2] : vector<1x8x256xf32> to vector<1xf32>
    %53 = vector.shape_cast %52 : vector<1xf32> to vector<1x1x1xf32>
    %54 = vector.extract %53[0, 0, 0] : f32 from vector<1x1x1xf32>
    %cst_19 = arith.constant 4.8828125E-4 : f32
    %55 = arith.mulf %54, %cst_19 : f32
    %56 = arith.mulf %49, %49 : f32
    %57 = arith.subf %55, %56 : f32
    %58 = vector.broadcast %49 : f32 to vector<8x256xf32>
    %59 = arith.subf %42, %58 : vector<8x256xf32>
    %cst_20 = arith.constant 9.99999974E-6 : f32
    %60 = arith.addf %57, %cst_20 : f32
    %61 = math.rsqrt %60 : f32
    %62 = vector.broadcast %61 : f32 to vector<8x256xf32>
    %63 = arith.mulf %59, %62 : vector<8x256xf32>
    %64 = vector.broadcast %43 : vector<8x1xf32> to vector<8x256xf32>
    %65 = arith.mulf %63, %64 : vector<8x256xf32>
    %66 = vector.broadcast %44 : vector<8x1xf32> to vector<8x256xf32>
    %67 = arith.addf %65, %66 : vector<8x256xf32>
    %cst_21 = arith.constant 5.000000e-01 : f32
    %68 = vector.broadcast %cst_21 : f32 to vector<8x256xf32>
    %69 = arith.mulf %68, %67 : vector<8x256xf32>
    %cst_22 = arith.constant 0.707106769 : f32
    %70 = vector.broadcast %cst_22 : f32 to vector<8x256xf32>
    %71 = arith.mulf %67, %70 : vector<8x256xf32>
    %72 = math.absf %71 : vector<8x256xf32>
    %cst_23 = arith.constant 0.327591091 : f32
    %73 = vector.broadcast %cst_23 : f32 to vector<8x256xf32>
    %74 = arith.mulf %73, %72 : vector<8x256xf32>
    %cst_24 = arith.constant 1.000000e+00 : f32
    %75 = vector.broadcast %cst_24 : f32 to vector<8x256xf32>
    %76 = arith.addf %75, %74 : vector<8x256xf32>
    %cst_25 = arith.constant 1.000000e+00 : f32
    %77 = vector.broadcast %cst_25 : f32 to vector<8x256xf32>
    %78 = arith.divf %77, %76 : vector<8x256xf32>
    %cst_26 = arith.constant 1.06140542 : f32
    %79 = vector.broadcast %cst_26 : f32 to vector<8x256xf32>
    %80 = arith.mulf %79, %78 : vector<8x256xf32>
    %cst_27 = arith.constant -1.45315206 : f32
    %81 = vector.broadcast %cst_27 : f32 to vector<8x256xf32>
    %82 = arith.addf %80, %81 : vector<8x256xf32>
    %83 = arith.mulf %82, %78 : vector<8x256xf32>
    %cst_28 = arith.constant 1.42141378 : f32
    %84 = vector.broadcast %cst_28 : f32 to vector<8x256xf32>
    %85 = arith.addf %83, %84 : vector<8x256xf32>
    %86 = arith.mulf %85, %78 : vector<8x256xf32>
    %cst_29 = arith.constant -0.284496725 : f32
    %87 = vector.broadcast %cst_29 : f32 to vector<8x256xf32>
    %88 = arith.addf %86, %87 : vector<8x256xf32>
    %89 = arith.mulf %88, %78 : vector<8x256xf32>
    %cst_30 = arith.constant 0.254829586 : f32
    %90 = vector.broadcast %cst_30 : f32 to vector<8x256xf32>
    %91 = arith.addf %89, %90 : vector<8x256xf32>
    %92 = arith.mulf %91, %78 : vector<8x256xf32>
    %cst_31 = arith.constant 0.000000e+00 : f32
    %93 = vector.broadcast %cst_31 : f32 to vector<8x256xf32>
    %94 = arith.subf %93, %72 : vector<8x256xf32>
    %95 = arith.mulf %94, %72 : vector<8x256xf32>
    %96 = math.exp %95 : vector<8x256xf32>
    %97 = arith.mulf %92, %96 : vector<8x256xf32>
    %cst_32 = arith.constant 1.000000e+00 : f32
    %98 = vector.broadcast %cst_32 : f32 to vector<8x256xf32>
    %99 = arith.subf %98, %97 : vector<8x256xf32>
    %cst_33 = arith.constant 0.000000e+00 : f32
    %100 = vector.broadcast %cst_33 : f32 to vector<8x256xf32>
    %101 = arith.cmpf oge, %71, %100 : vector<8x256xf32>
    %cst_34 = arith.constant 0.000000e+00 : f32
    %102 = vector.broadcast %cst_34 : f32 to vector<8x256xf32>
    %103 = arith.subf %102, %99 : vector<8x256xf32>
    %104 = arith.select %101, %99, %103 : vector<8x256xi1>, vector<8x256xf32>
    %cst_35 = arith.constant 1.000000e+00 : f32
    %105 = vector.broadcast %cst_35 : f32 to vector<8x256xf32>
    %106 = arith.addf %105, %104 : vector<8x256xf32>
    %107 = arith.mulf %69, %106 : vector<8x256xf32>
    %c0_36 = arith.constant 0 : index
    %c0_37 = arith.constant 0 : index
    %108 = vector.load %arg9[%c0_36, %c0_37] : memref<8x72xf32, #tpu.memory_space<vmem>>, vector<8x72xf32>
    %c17_i32_38 = arith.constant 17 : i32
    %109 = tpu.dynamic_rotate %107 by %c17_i32_38 dim 1 : vector<8x256xf32>, i32 -> vector<8x256xf32>
    %110 = vector.broadcast %1 : vector<1x256xf32> to vector<8x256xf32>
    %111 = arith.mulf %109, %110 : vector<8x256xf32>
    %c16_i32_39 = arith.constant 16 : i32
    %112 = tpu.dynamic_rotate %107 by %c16_i32_39 dim 1 : vector<8x256xf32>, i32 -> vector<8x256xf32>
    %113 = vector.broadcast %2 : vector<1x256xf32> to vector<8x256xf32>
    %114 = arith.mulf %112, %113 : vector<8x256xf32>
    %c15_i32_40 = arith.constant 15 : i32
    %115 = tpu.dynamic_rotate %107 by %c15_i32_40 dim 1 : vector<8x256xf32>, i32 -> vector<8x256xf32>
    %116 = vector.broadcast %3 : vector<1x256xf32> to vector<8x256xf32>
    %117 = arith.mulf %115, %116 : vector<8x256xf32>
    %c1_i32_41 = arith.constant 1 : i32
    %118 = tpu.dynamic_rotate %107 by %c1_i32_41 dim 1 : vector<8x256xf32>, i32 -> vector<8x256xf32>
    %119 = vector.broadcast %4 : vector<1x256xf32> to vector<8x256xf32>
    %120 = arith.mulf %118, %119 : vector<8x256xf32>
    %c255_i32_42 = arith.constant 255 : i32
    %121 = tpu.dynamic_rotate %107 by %c255_i32_42 dim 1 : vector<8x256xf32>, i32 -> vector<8x256xf32>
    %122 = vector.broadcast %5 : vector<1x256xf32> to vector<8x256xf32>
    %123 = arith.mulf %121, %122 : vector<8x256xf32>
    %c241_i32_43 = arith.constant 241 : i32
    %124 = tpu.dynamic_rotate %107 by %c241_i32_43 dim 1 : vector<8x256xf32>, i32 -> vector<8x256xf32>
    %125 = vector.broadcast %6 : vector<1x256xf32> to vector<8x256xf32>
    %126 = arith.mulf %124, %125 : vector<8x256xf32>
    %c240_i32_44 = arith.constant 240 : i32
    %127 = tpu.dynamic_rotate %107 by %c240_i32_44 dim 1 : vector<8x256xf32>, i32 -> vector<8x256xf32>
    %128 = vector.broadcast %7 : vector<1x256xf32> to vector<8x256xf32>
    %129 = arith.mulf %127, %128 : vector<8x256xf32>
    %c239_i32_45 = arith.constant 239 : i32
    %130 = tpu.dynamic_rotate %107 by %c239_i32_45 dim 1 : vector<8x256xf32>, i32 -> vector<8x256xf32>
    %131 = vector.broadcast %8 : vector<1x256xf32> to vector<8x256xf32>
    %132 = arith.mulf %130, %131 : vector<8x256xf32>
    %133 = tpu.concatenate %111, %114, %117, %120, %107, %123, %126, %129, %132 in 0 : vector<8x256xf32>, vector<8x256xf32>, vector<8x256xf32>, vector<8x256xf32>, vector<8x256xf32>, vector<8x256xf32>, vector<8x256xf32>, vector<8x256xf32>, vector<8x256xf32> -> vector<72x256xf32>
    %cst_46 = arith.constant dense<0.000000e+00> : vector<8x256xf32>
    %134 = tpu.matmul %108, %133, %cst_46 {dimension_numbers = #tpu.dot_dimension_numbers<[1], [0], [0], [1], [0, 0, 1, 1], [], []>} : vector<8x72xf32>, vector<72x256xf32>, vector<8x256xf32> -> vector<8x256xf32>
    %c0_47 = arith.constant 0 : index
    %c0_48 = arith.constant 0 : index
    %135 = vector.load %arg10[%c0_47, %c0_48] : memref<8x1xf32, #tpu.memory_space<vmem>>, vector<8x1xf32>
    %c0_49 = arith.constant 0 : index
    %c0_50 = arith.constant 0 : index
    %136 = vector.load %arg11[%c0_49, %c0_50] : memref<8x1xf32, #tpu.memory_space<vmem>>, vector<8x1xf32>
    %137 = vector.shape_cast %134 : vector<8x256xf32> to vector<1x8x256xf32>
    %cst_51 = arith.constant dense<0.000000e+00> : vector<1xf32>
    %138 = vector.multi_reduction <add>, %137, %cst_51 [1, 2] : vector<1x8x256xf32> to vector<1xf32>
    %139 = vector.shape_cast %138 : vector<1xf32> to vector<1x1x1xf32>
    %140 = vector.extract %139[0, 0, 0] : f32 from vector<1x1x1xf32>
    %cst_52 = arith.constant 4.8828125E-4 : f32
    %141 = arith.mulf %140, %cst_52 : f32
    %142 = arith.mulf %134, %134 : vector<8x256xf32>
    %143 = vector.shape_cast %142 : vector<8x256xf32> to vector<1x8x256xf32>
    %cst_53 = arith.constant dense<0.000000e+00> : vector<1xf32>
    %144 = vector.multi_reduction <add>, %143, %cst_53 [1, 2] : vector<1x8x256xf32> to vector<1xf32>
    %145 = vector.shape_cast %144 : vector<1xf32> to vector<1x1x1xf32>
    %146 = vector.extract %145[0, 0, 0] : f32 from vector<1x1x1xf32>
    %cst_54 = arith.constant 4.8828125E-4 : f32
    %147 = arith.mulf %146, %cst_54 : f32
    %148 = arith.mulf %141, %141 : f32
    %149 = arith.subf %147, %148 : f32
    %150 = vector.broadcast %141 : f32 to vector<8x256xf32>
    %151 = arith.subf %134, %150 : vector<8x256xf32>
    %cst_55 = arith.constant 9.99999974E-6 : f32
    %152 = arith.addf %149, %cst_55 : f32
    %153 = math.rsqrt %152 : f32
    %154 = vector.broadcast %153 : f32 to vector<8x256xf32>
    %155 = arith.mulf %151, %154 : vector<8x256xf32>
    %156 = vector.broadcast %135 : vector<8x1xf32> to vector<8x256xf32>
    %157 = arith.mulf %155, %156 : vector<8x256xf32>
    %158 = vector.broadcast %136 : vector<8x1xf32> to vector<8x256xf32>
    %159 = arith.addf %157, %158 : vector<8x256xf32>
    %160 = arith.addf %15, %159 : vector<8x256xf32>
    %cst_56 = arith.constant 5.000000e-01 : f32
    %161 = vector.broadcast %cst_56 : f32 to vector<8x256xf32>
    %162 = arith.mulf %161, %160 : vector<8x256xf32>
    %cst_57 = arith.constant 0.707106769 : f32
    %163 = vector.broadcast %cst_57 : f32 to vector<8x256xf32>
    %164 = arith.mulf %160, %163 : vector<8x256xf32>
    %165 = math.absf %164 : vector<8x256xf32>
    %cst_58 = arith.constant 0.327591091 : f32
    %166 = vector.broadcast %cst_58 : f32 to vector<8x256xf32>
    %167 = arith.mulf %166, %165 : vector<8x256xf32>
    %cst_59 = arith.constant 1.000000e+00 : f32
    %168 = vector.broadcast %cst_59 : f32 to vector<8x256xf32>
    %169 = arith.addf %168, %167 : vector<8x256xf32>
    %cst_60 = arith.constant 1.000000e+00 : f32
    %170 = vector.broadcast %cst_60 : f32 to vector<8x256xf32>
    %171 = arith.divf %170, %169 : vector<8x256xf32>
    %cst_61 = arith.constant 1.06140542 : f32
    %172 = vector.broadcast %cst_61 : f32 to vector<8x256xf32>
    %173 = arith.mulf %172, %171 : vector<8x256xf32>
    %cst_62 = arith.constant -1.45315206 : f32
    %174 = vector.broadcast %cst_62 : f32 to vector<8x256xf32>
    %175 = arith.addf %173, %174 : vector<8x256xf32>
    %176 = arith.mulf %175, %171 : vector<8x256xf32>
    %cst_63 = arith.constant 1.42141378 : f32
    %177 = vector.broadcast %cst_63 : f32 to vector<8x256xf32>
    %178 = arith.addf %176, %177 : vector<8x256xf32>
    %179 = arith.mulf %178, %171 : vector<8x256xf32>
    %cst_64 = arith.constant -0.284496725 : f32
    %180 = vector.broadcast %cst_64 : f32 to vector<8x256xf32>
    %181 = arith.addf %179, %180 : vector<8x256xf32>
    %182 = arith.mulf %181, %171 : vector<8x256xf32>
    %cst_65 = arith.constant 0.254829586 : f32
    %183 = vector.broadcast %cst_65 : f32 to vector<8x256xf32>
    %184 = arith.addf %182, %183 : vector<8x256xf32>
    %185 = arith.mulf %184, %171 : vector<8x256xf32>
    %cst_66 = arith.constant 0.000000e+00 : f32
    %186 = vector.broadcast %cst_66 : f32 to vector<8x256xf32>
    %187 = arith.subf %186, %165 : vector<8x256xf32>
    %188 = arith.mulf %187, %165 : vector<8x256xf32>
    %189 = math.exp %188 : vector<8x256xf32>
    %190 = arith.mulf %185, %189 : vector<8x256xf32>
    %cst_67 = arith.constant 1.000000e+00 : f32
    %191 = vector.broadcast %cst_67 : f32 to vector<8x256xf32>
    %192 = arith.subf %191, %190 : vector<8x256xf32>
    %cst_68 = arith.constant 0.000000e+00 : f32
    %193 = vector.broadcast %cst_68 : f32 to vector<8x256xf32>
    %194 = arith.cmpf oge, %164, %193 : vector<8x256xf32>
    %cst_69 = arith.constant 0.000000e+00 : f32
    %195 = vector.broadcast %cst_69 : f32 to vector<8x256xf32>
    %196 = arith.subf %195, %192 : vector<8x256xf32>
    %197 = arith.select %194, %192, %196 : vector<8x256xi1>, vector<8x256xf32>
    %cst_70 = arith.constant 1.000000e+00 : f32
    %198 = vector.broadcast %cst_70 : f32 to vector<8x256xf32>
    %199 = arith.addf %198, %197 : vector<8x256xf32>
    %200 = arith.mulf %162, %199 : vector<8x256xf32>
    %c0_71 = arith.constant 0 : index
    %c0_72 = arith.constant 0 : index
    %201 = vector.load %arg12[%c0_71, %c0_72] : memref<4x72xf32, #tpu.memory_space<vmem>>, vector<4x72xf32>
    %c17_i32_73 = arith.constant 17 : i32
    %202 = tpu.dynamic_rotate %200 by %c17_i32_73 dim 1 : vector<8x256xf32>, i32 -> vector<8x256xf32>
    %203 = vector.broadcast %1 : vector<1x256xf32> to vector<8x256xf32>
    %204 = arith.mulf %202, %203 : vector<8x256xf32>
    %c16_i32_74 = arith.constant 16 : i32
    %205 = tpu.dynamic_rotate %200 by %c16_i32_74 dim 1 : vector<8x256xf32>, i32 -> vector<8x256xf32>
    %206 = vector.broadcast %2 : vector<1x256xf32> to vector<8x256xf32>
    %207 = arith.mulf %205, %206 : vector<8x256xf32>
    %c15_i32_75 = arith.constant 15 : i32
    %208 = tpu.dynamic_rotate %200 by %c15_i32_75 dim 1 : vector<8x256xf32>, i32 -> vector<8x256xf32>
    %209 = vector.broadcast %3 : vector<1x256xf32> to vector<8x256xf32>
    %210 = arith.mulf %208, %209 : vector<8x256xf32>
    %c1_i32_76 = arith.constant 1 : i32
    %211 = tpu.dynamic_rotate %200 by %c1_i32_76 dim 1 : vector<8x256xf32>, i32 -> vector<8x256xf32>
    %212 = vector.broadcast %4 : vector<1x256xf32> to vector<8x256xf32>
    %213 = arith.mulf %211, %212 : vector<8x256xf32>
    %c255_i32_77 = arith.constant 255 : i32
    %214 = tpu.dynamic_rotate %200 by %c255_i32_77 dim 1 : vector<8x256xf32>, i32 -> vector<8x256xf32>
    %215 = vector.broadcast %5 : vector<1x256xf32> to vector<8x256xf32>
    %216 = arith.mulf %214, %215 : vector<8x256xf32>
    %c241_i32_78 = arith.constant 241 : i32
    %217 = tpu.dynamic_rotate %200 by %c241_i32_78 dim 1 : vector<8x256xf32>, i32 -> vector<8x256xf32>
    %218 = vector.broadcast %6 : vector<1x256xf32> to vector<8x256xf32>
    %219 = arith.mulf %217, %218 : vector<8x256xf32>
    %c240_i32_79 = arith.constant 240 : i32
    %220 = tpu.dynamic_rotate %200 by %c240_i32_79 dim 1 : vector<8x256xf32>, i32 -> vector<8x256xf32>
    %221 = vector.broadcast %7 : vector<1x256xf32> to vector<8x256xf32>
    %222 = arith.mulf %220, %221 : vector<8x256xf32>
    %c239_i32_80 = arith.constant 239 : i32
    %223 = tpu.dynamic_rotate %200 by %c239_i32_80 dim 1 : vector<8x256xf32>, i32 -> vector<8x256xf32>
    %224 = vector.broadcast %8 : vector<1x256xf32> to vector<8x256xf32>
    %225 = arith.mulf %223, %224 : vector<8x256xf32>
    %226 = tpu.concatenate %204, %207, %210, %213, %200, %216, %219, %222, %225 in 0 : vector<8x256xf32>, vector<8x256xf32>, vector<8x256xf32>, vector<8x256xf32>, vector<8x256xf32>, vector<8x256xf32>, vector<8x256xf32>, vector<8x256xf32>, vector<8x256xf32> -> vector<72x256xf32>
    %cst_81 = arith.constant dense<0.000000e+00> : vector<4x256xf32>
    %227 = tpu.matmul %201, %226, %cst_81 {dimension_numbers = #tpu.dot_dimension_numbers<[1], [0], [0], [1], [0, 0, 1, 1], [], []>} : vector<4x72xf32>, vector<72x256xf32>, vector<4x256xf32> -> vector<4x256xf32>
    %c0_82 = arith.constant 0 : index
    %c0_83 = arith.constant 0 : index
    %228 = vector.load %arg13[%c0_82, %c0_83] : memref<4x1xf32, #tpu.memory_space<vmem>>, vector<4x1xf32>
    %c0_84 = arith.constant 0 : index
    %c0_85 = arith.constant 0 : index
    %229 = vector.load %arg14[%c0_84, %c0_85] : memref<4x1xf32, #tpu.memory_space<vmem>>, vector<4x1xf32>
    %230 = vector.shape_cast %227 : vector<4x256xf32> to vector<1x4x256xf32>
    %cst_86 = arith.constant dense<0.000000e+00> : vector<1xf32>
    %231 = vector.multi_reduction <add>, %230, %cst_86 [1, 2] : vector<1x4x256xf32> to vector<1xf32>
    %232 = vector.shape_cast %231 : vector<1xf32> to vector<1x1x1xf32>
    %233 = vector.extract %232[0, 0, 0] : f32 from vector<1x1x1xf32>
    %cst_87 = arith.constant 9.765625E-4 : f32
    %234 = arith.mulf %233, %cst_87 : f32
    %235 = arith.mulf %227, %227 : vector<4x256xf32>
    %236 = vector.shape_cast %235 : vector<4x256xf32> to vector<1x4x256xf32>
    %cst_88 = arith.constant dense<0.000000e+00> : vector<1xf32>
    %237 = vector.multi_reduction <add>, %236, %cst_88 [1, 2] : vector<1x4x256xf32> to vector<1xf32>
    %238 = vector.shape_cast %237 : vector<1xf32> to vector<1x1x1xf32>
    %239 = vector.extract %238[0, 0, 0] : f32 from vector<1x1x1xf32>
    %cst_89 = arith.constant 9.765625E-4 : f32
    %240 = arith.mulf %239, %cst_89 : f32
    %241 = arith.mulf %234, %234 : f32
    %242 = arith.subf %240, %241 : f32
    %243 = vector.broadcast %234 : f32 to vector<4x256xf32>
    %244 = arith.subf %227, %243 : vector<4x256xf32>
    %cst_90 = arith.constant 9.99999974E-6 : f32
    %245 = arith.addf %242, %cst_90 : f32
    %246 = math.rsqrt %245 : f32
    %247 = vector.broadcast %246 : f32 to vector<4x256xf32>
    %248 = arith.mulf %244, %247 : vector<4x256xf32>
    %249 = vector.broadcast %228 : vector<4x1xf32> to vector<4x256xf32>
    %250 = arith.mulf %248, %249 : vector<4x256xf32>
    %251 = vector.broadcast %229 : vector<4x1xf32> to vector<4x256xf32>
    %252 = arith.addf %250, %251 : vector<4x256xf32>
    %cst_91 = arith.constant 5.000000e-01 : f32
    %253 = vector.broadcast %cst_91 : f32 to vector<4x256xf32>
    %254 = arith.mulf %253, %252 : vector<4x256xf32>
    %cst_92 = arith.constant 0.707106769 : f32
    %255 = vector.broadcast %cst_92 : f32 to vector<4x256xf32>
    %256 = arith.mulf %252, %255 : vector<4x256xf32>
    %257 = math.absf %256 : vector<4x256xf32>
    %cst_93 = arith.constant 0.327591091 : f32
    %258 = vector.broadcast %cst_93 : f32 to vector<4x256xf32>
    %259 = arith.mulf %258, %257 : vector<4x256xf32>
    %cst_94 = arith.constant 1.000000e+00 : f32
    %260 = vector.broadcast %cst_94 : f32 to vector<4x256xf32>
    %261 = arith.addf %260, %259 : vector<4x256xf32>
    %cst_95 = arith.constant 1.000000e+00 : f32
    %262 = vector.broadcast %cst_95 : f32 to vector<4x256xf32>
    %263 = arith.divf %262, %261 : vector<4x256xf32>
    %cst_96 = arith.constant 1.06140542 : f32
    %264 = vector.broadcast %cst_96 : f32 to vector<4x256xf32>
    %265 = arith.mulf %264, %263 : vector<4x256xf32>
    %cst_97 = arith.constant -1.45315206 : f32
    %266 = vector.broadcast %cst_97 : f32 to vector<4x256xf32>
    %267 = arith.addf %265, %266 : vector<4x256xf32>
    %268 = arith.mulf %267, %263 : vector<4x256xf32>
    %cst_98 = arith.constant 1.42141378 : f32
    %269 = vector.broadcast %cst_98 : f32 to vector<4x256xf32>
    %270 = arith.addf %268, %269 : vector<4x256xf32>
    %271 = arith.mulf %270, %263 : vector<4x256xf32>
    %cst_99 = arith.constant -0.284496725 : f32
    %272 = vector.broadcast %cst_99 : f32 to vector<4x256xf32>
    %273 = arith.addf %271, %272 : vector<4x256xf32>
    %274 = arith.mulf %273, %263 : vector<4x256xf32>
    %cst_100 = arith.constant 0.254829586 : f32
    %275 = vector.broadcast %cst_100 : f32 to vector<4x256xf32>
    %276 = arith.addf %274, %275 : vector<4x256xf32>
    %277 = arith.mulf %276, %263 : vector<4x256xf32>
    %cst_101 = arith.constant 0.000000e+00 : f32
    %278 = vector.broadcast %cst_101 : f32 to vector<4x256xf32>
    %279 = arith.subf %278, %257 : vector<4x256xf32>
    %280 = arith.mulf %279, %257 : vector<4x256xf32>
    %281 = math.exp %280 : vector<4x256xf32>
    %282 = arith.mulf %277, %281 : vector<4x256xf32>
    %cst_102 = arith.constant 1.000000e+00 : f32
    %283 = vector.broadcast %cst_102 : f32 to vector<4x256xf32>
    %284 = arith.subf %283, %282 : vector<4x256xf32>
    %cst_103 = arith.constant 0.000000e+00 : f32
    %285 = vector.broadcast %cst_103 : f32 to vector<4x256xf32>
    %286 = arith.cmpf oge, %256, %285 : vector<4x256xf32>
    %cst_104 = arith.constant 0.000000e+00 : f32
    %287 = vector.broadcast %cst_104 : f32 to vector<4x256xf32>
    %288 = arith.subf %287, %284 : vector<4x256xf32>
    %289 = arith.select %286, %284, %288 : vector<4x256xi1>, vector<4x256xf32>
    %cst_105 = arith.constant 1.000000e+00 : f32
    %290 = vector.broadcast %cst_105 : f32 to vector<4x256xf32>
    %291 = arith.addf %290, %289 : vector<4x256xf32>
    %292 = arith.mulf %254, %291 : vector<4x256xf32>
    %c0_106 = arith.constant 0 : index
    %c0_107 = arith.constant 0 : index
    %293 = vector.load %arg15[%c0_106, %c0_107] : memref<4x36xf32, #tpu.memory_space<vmem>>, vector<4x36xf32>
    %c17_i32_108 = arith.constant 17 : i32
    %294 = tpu.dynamic_rotate %292 by %c17_i32_108 dim 1 : vector<4x256xf32>, i32 -> vector<4x256xf32>
    %295 = vector.broadcast %1 : vector<1x256xf32> to vector<4x256xf32>
    %296 = arith.mulf %294, %295 : vector<4x256xf32>
    %c16_i32_109 = arith.constant 16 : i32
    %297 = tpu.dynamic_rotate %292 by %c16_i32_109 dim 1 : vector<4x256xf32>, i32 -> vector<4x256xf32>
    %298 = vector.broadcast %2 : vector<1x256xf32> to vector<4x256xf32>
    %299 = arith.mulf %297, %298 : vector<4x256xf32>
    %c15_i32_110 = arith.constant 15 : i32
    %300 = tpu.dynamic_rotate %292 by %c15_i32_110 dim 1 : vector<4x256xf32>, i32 -> vector<4x256xf32>
    %301 = vector.broadcast %3 : vector<1x256xf32> to vector<4x256xf32>
    %302 = arith.mulf %300, %301 : vector<4x256xf32>
    %c1_i32_111 = arith.constant 1 : i32
    %303 = tpu.dynamic_rotate %292 by %c1_i32_111 dim 1 : vector<4x256xf32>, i32 -> vector<4x256xf32>
    %304 = vector.broadcast %4 : vector<1x256xf32> to vector<4x256xf32>
    %305 = arith.mulf %303, %304 : vector<4x256xf32>
    %c255_i32_112 = arith.constant 255 : i32
    %306 = tpu.dynamic_rotate %292 by %c255_i32_112 dim 1 : vector<4x256xf32>, i32 -> vector<4x256xf32>
    %307 = vector.broadcast %5 : vector<1x256xf32> to vector<4x256xf32>
    %308 = arith.mulf %306, %307 : vector<4x256xf32>
    %c241_i32_113 = arith.constant 241 : i32
    %309 = tpu.dynamic_rotate %292 by %c241_i32_113 dim 1 : vector<4x256xf32>, i32 -> vector<4x256xf32>
    %310 = vector.broadcast %6 : vector<1x256xf32> to vector<4x256xf32>
    %311 = arith.mulf %309, %310 : vector<4x256xf32>
    %c240_i32_114 = arith.constant 240 : i32
    %312 = tpu.dynamic_rotate %292 by %c240_i32_114 dim 1 : vector<4x256xf32>, i32 -> vector<4x256xf32>
    %313 = vector.broadcast %7 : vector<1x256xf32> to vector<4x256xf32>
    %314 = arith.mulf %312, %313 : vector<4x256xf32>
    %c239_i32_115 = arith.constant 239 : i32
    %315 = tpu.dynamic_rotate %292 by %c239_i32_115 dim 1 : vector<4x256xf32>, i32 -> vector<4x256xf32>
    %316 = vector.broadcast %8 : vector<1x256xf32> to vector<4x256xf32>
    %317 = arith.mulf %315, %316 : vector<4x256xf32>
    %318 = tpu.concatenate %296, %299, %302, %305, %292, %308, %311, %314, %317 in 0 : vector<4x256xf32>, vector<4x256xf32>, vector<4x256xf32>, vector<4x256xf32>, vector<4x256xf32>, vector<4x256xf32>, vector<4x256xf32>, vector<4x256xf32>, vector<4x256xf32> -> vector<36x256xf32>
    %cst_116 = arith.constant dense<0.000000e+00> : vector<4x256xf32>
    %319 = tpu.matmul %293, %318, %cst_116 {dimension_numbers = #tpu.dot_dimension_numbers<[1], [0], [0], [1], [0, 0, 1, 1], [], []>} : vector<4x36xf32>, vector<36x256xf32>, vector<4x256xf32> -> vector<4x256xf32>
    %c0_117 = arith.constant 0 : index
    %c0_118 = arith.constant 0 : index
    %320 = vector.load %arg16[%c0_117, %c0_118] : memref<4x1xf32, #tpu.memory_space<vmem>>, vector<4x1xf32>
    %c0_119 = arith.constant 0 : index
    %c0_120 = arith.constant 0 : index
    %321 = vector.load %arg17[%c0_119, %c0_120] : memref<4x1xf32, #tpu.memory_space<vmem>>, vector<4x1xf32>
    %322 = vector.shape_cast %319 : vector<4x256xf32> to vector<1x4x256xf32>
    %cst_121 = arith.constant dense<0.000000e+00> : vector<1xf32>
    %323 = vector.multi_reduction <add>, %322, %cst_121 [1, 2] : vector<1x4x256xf32> to vector<1xf32>
    %324 = vector.shape_cast %323 : vector<1xf32> to vector<1x1x1xf32>
    %325 = vector.extract %324[0, 0, 0] : f32 from vector<1x1x1xf32>
    %cst_122 = arith.constant 9.765625E-4 : f32
    %326 = arith.mulf %325, %cst_122 : f32
    %327 = arith.mulf %319, %319 : vector<4x256xf32>
    %328 = vector.shape_cast %327 : vector<4x256xf32> to vector<1x4x256xf32>
    %cst_123 = arith.constant dense<0.000000e+00> : vector<1xf32>
    %329 = vector.multi_reduction <add>, %328, %cst_123 [1, 2] : vector<1x4x256xf32> to vector<1xf32>
    %330 = vector.shape_cast %329 : vector<1xf32> to vector<1x1x1xf32>
    %331 = vector.extract %330[0, 0, 0] : f32 from vector<1x1x1xf32>
    %cst_124 = arith.constant 9.765625E-4 : f32
    %332 = arith.mulf %331, %cst_124 : f32
    %333 = arith.mulf %326, %326 : f32
    %334 = arith.subf %332, %333 : f32
    %335 = vector.broadcast %326 : f32 to vector<4x256xf32>
    %336 = arith.subf %319, %335 : vector<4x256xf32>
    %cst_125 = arith.constant 9.99999974E-6 : f32
    %337 = arith.addf %334, %cst_125 : f32
    %338 = math.rsqrt %337 : f32
    %339 = vector.broadcast %338 : f32 to vector<4x256xf32>
    %340 = arith.mulf %336, %339 : vector<4x256xf32>
    %341 = vector.broadcast %320 : vector<4x1xf32> to vector<4x256xf32>
    %342 = arith.mulf %340, %341 : vector<4x256xf32>
    %343 = vector.broadcast %321 : vector<4x1xf32> to vector<4x256xf32>
    %344 = arith.addf %342, %343 : vector<4x256xf32>
    %c0_126 = arith.constant 0 : index
    %c0_127 = arith.constant 0 : index
    %c0_128 = arith.constant 0 : index
    %345 = vector.load %arg3[%c0_126, %c0_127, %c0_128] : memref<1x1x32xf32, #tpu.memory_space<vmem>>, vector<1x1x32xf32>
    %346 = vector.shape_cast %345 : vector<1x1x32xf32> to vector<1x32xf32>
    %cst_129 = arith.constant 0.000000e+00 : f32
    %347 = vector.broadcast %cst_129 : f32 to vector<1x32xf32>
    %348 = arith.subf %347, %346 : vector<1x32xf32>
    %349 = math.exp %348 : vector<1x32xf32>
    %cst_130 = arith.constant 1.000000e+00 : f32
    %350 = vector.broadcast %cst_130 : f32 to vector<1x32xf32>
    %351 = arith.addf %350, %349 : vector<1x32xf32>
    %cst_131 = arith.constant 1.000000e+00 : f32
    %352 = vector.broadcast %cst_131 : f32 to vector<1x32xf32>
    %353 = arith.divf %352, %351 : vector<1x32xf32>
    %354 = arith.mulf %346, %353 : vector<1x32xf32>
    %c0_132 = arith.constant 0 : index
    %c0_133 = arith.constant 0 : index
    %355 = vector.load %arg18[%c0_132, %c0_133] : memref<4x32xf32, #tpu.memory_space<vmem>>, vector<4x32xf32>
    %356 = vector.broadcast %354 : vector<1x32xf32> to vector<4x32xf32>
    %357 = arith.mulf %355, %356 : vector<4x32xf32>
    %cst_134 = arith.constant dense<0.000000e+00> : vector<4xf32>
    %358 = vector.multi_reduction <add>, %357, %cst_134 [1] : vector<4x32xf32> to vector<4xf32>
    %359 = vector.shape_cast %358 : vector<4xf32> to vector<4x1xf32>
    %c0_135 = arith.constant 0 : index
    %c0_136 = arith.constant 0 : index
    %360 = vector.load %arg19[%c0_135, %c0_136] : memref<4x1xf32, #tpu.memory_space<vmem>>, vector<4x1xf32>
    %361 = arith.addf %359, %360 : vector<4x1xf32>
    %362 = vector.broadcast %361 : vector<4x1xf32> to vector<4x256xf32>
    %363 = arith.addf %344, %362 : vector<4x256xf32>
    %c0_137 = arith.constant 0 : index
    %c0_138 = arith.constant 0 : index
    %c0_139 = arith.constant 0 : index
    %364 = vector.load %arg20[%c0_137, %c0_138, %c0_139] : memref<1x4x256xf32, #tpu.memory_space<vmem>>, vector<1x4x256xf32>
    %365 = vector.shape_cast %364 : vector<1x4x256xf32> to vector<4x256xf32>
    %366 = vector.shape_cast %363 : vector<4x256xf32> to vector<1x4x256xf32>
    tpu.vector_store %arg20[%c0_137, %c0_138, %c0_139], %366 {strides = array<i32>} : memref<1x4x256xf32, #tpu.memory_space<vmem>>, vector<1x4x256xf32>,
    return
  }
  func.func @transform_0(%arg0: i32) -> (i32, i32, i32) {
    %c0_i32 = arith.constant 0 : i32
    %c0_i32_0 = arith.constant 0 : i32
    %c0_i32_1 = arith.constant 0 : i32
    return %arg0, %c0_i32, %c0_i32_0 : i32, i32, i32
  }
  func.func @transform_1(%arg0: i32) -> (i32, i32, i32) {
    %c0_i32 = arith.constant 0 : i32
    %c0_i32_0 = arith.constant 0 : i32
    %c0_i32_1 = arith.constant 0 : i32
    return %arg0, %c0_i32, %c0_i32_0 : i32, i32, i32
  }
  func.func @transform_2(%arg0: i32) -> (i32, i32, i32) {
    %c0_i32 = arith.constant 0 : i32
    %c0_i32_0 = arith.constant 0 : i32
    %c0_i32_1 = arith.constant 0 : i32
    return %arg0, %c0_i32, %c0_i32_0 : i32, i32, i32
  }
  func.func @transform_3(%arg0: i32) -> (i32, i32) {
    %c0_i32 = arith.constant 0 : i32
    %c0_i32_0 = arith.constant 0 : i32
    %c0_i32_1 = arith.constant 0 : i32
    return %c0_i32, %c0_i32_0 : i32, i32
  }
  func.func @transform_4(%arg0: i32) -> (i32, i32) {
    %c0_i32 = arith.constant 0 : i32
    %c0_i32_0 = arith.constant 0 : i32
    %c0_i32_1 = arith.constant 0 : i32
    return %c0_i32, %c0_i32_0 : i32, i32
  }
  func.func @transform_5(%arg0: i32) -> (i32, i32) {
    %c0_i32 = arith.constant 0 : i32
    %c0_i32_0 = arith.constant 0 : i32
    %c0_i32_1 = arith.constant 0 : i32
    return %c0_i32, %c0_i32_0 : i32, i32
  }
  func.func @transform_6(%arg0: i32) -> (i32, i32) {
    %c0_i32 = arith.constant 0 : i32
    %c0_i32_0 = arith.constant 0 : i32
    %c0_i32_1 = arith.constant 0 : i32
    return %c0_i32, %c0_i32_0 : i32, i32
  }
  func.func @transform_7(%arg0: i32) -> (i32, i32) {
    %c0_i32 = arith.constant 0 : i32
    %c0_i32_0 = arith.constant 0 : i32
    %c0_i32_1 = arith.constant 0 : i32
    return %c0_i32, %c0_i32_0 : i32, i32
  }
  func.func @transform_8(%arg0: i32) -> (i32, i32) {
    %c0_i32 = arith.constant 0 : i32
    %c0_i32_0 = arith.constant 0 : i32
    %c0_i32_1 = arith.constant 0 : i32
    return %c0_i32, %c0_i32_0 : i32, i32
  }
  func.func @transform_9(%arg0: i32) -> (i32, i32) {
    %c0_i32 = arith.constant 0 : i32
    %c0_i32_0 = arith.constant 0 : i32
    %c0_i32_1 = arith.constant 0 : i32
    return %c0_i32, %c0_i32_0 : i32, i32
  }
  func.func @transform_10(%arg0: i32) -> (i32, i32) {
    %c0_i32 = arith.constant 0 : i32
    %c0_i32_0 = arith.constant 0 : i32
    %c0_i32_1 = arith.constant 0 : i32
    return %c0_i32, %c0_i32_0 : i32, i32
  }
  func.func @transform_11(%arg0: i32) -> (i32, i32) {
    %c0_i32 = arith.constant 0 : i32
    %c0_i32_0 = arith.constant 0 : i32
    %c0_i32_1 = arith.constant 0 : i32
    return %c0_i32, %c0_i32_0 : i32, i32
  }
  func.func @transform_12(%arg0: i32) -> (i32, i32) {
    %c0_i32 = arith.constant 0 : i32
    %c0_i32_0 = arith.constant 0 : i32
    %c0_i32_1 = arith.constant 0 : i32
    return %c0_i32, %c0_i32_0 : i32, i32
  }
  func.func @transform_13(%arg0: i32) -> (i32, i32) {
    %c0_i32 = arith.constant 0 : i32
    %c0_i32_0 = arith.constant 0 : i32
    %c0_i32_1 = arith.constant 0 : i32
    return %c0_i32, %c0_i32_0 : i32, i32
  }
  func.func @transform_14(%arg0: i32) -> (i32, i32) {
    %c0_i32 = arith.constant 0 : i32
    %c0_i32_0 = arith.constant 0 : i32
    %c0_i32_1 = arith.constant 0 : i32
    return %c0_i32, %c0_i32_0 : i32, i32
  }
  func.func @transform_15(%arg0: i32) -> (i32, i32) {
    %c0_i32 = arith.constant 0 : i32
    %c0_i32_0 = arith.constant 0 : i32
    %c0_i32_1 = arith.constant 0 : i32
    return %c0_i32, %c0_i32_0 : i32, i32
  }
  func.func @transform_16(%arg0: i32) -> (i32, i32) {
    %c0_i32 = arith.constant 0 : i32
    %c0_i32_0 = arith.constant 0 : i32
    %c0_i32_1 = arith.constant 0 : i32
    return %c0_i32, %c0_i32_0 : i32, i32
  }
  func.func @transform_17(%arg0: i32) -> (i32, i32) {
    %c0_i32 = arith.constant 0 : i32
    %c0_i32_0 = arith.constant 0 : i32
    %c0_i32_1 = arith.constant 0 : i32
    return %c0_i32, %c0_i32_0 : i32, i32
  }
  func.func @transform_18(%arg0: i32) -> (i32, i32) {
    %c0_i32 = arith.constant 0 : i32
    %c0_i32_0 = arith.constant 0 : i32
    %c0_i32_1 = arith.constant 0 : i32
    return %c0_i32, %c0_i32_0 : i32, i32
  }
  func.func @transform_19(%arg0: i32) -> (i32, i32, i32) {
    %c0_i32 = arith.constant 0 : i32
    %c0_i32_0 = arith.constant 0 : i32
    %c0_i32_1 = arith.constant 0 : i32
    return %arg0, %c0_i32, %c0_i32_0 : i32, i32, i32
  }
}

</mosaic_0001>

<bundles_post_ra>
// kernel: tpu_custom_call.1
= control target key start
LH: loop header
LB: loop body
LE: loop exit
PB: predicated region body
PF: predicated region fallthrough
CT: control target
= control target key end

     0   :  { %s3092_s0 = inlined_call_operand.hbm [shape: f32[2,4,64], index: 0, kind: input, shape index: {}]   ;;  %s3093_s1 = inlined_call_operand.vmem [shape: f32[2,4,256], index: 1, kind: input, shape index: {}]   ;;  %s3094_s2 = inlined_call_operand.vmem [shape: f32[2,1,32], index: 2, kind: input, shape index: {}]   ;;  %s3095_s3 = inlined_call_operand.hbm [shape: f32[64,256], index: 3, kind: input, shape index: {}]   ;;  %s3096_s4 = inlined_call_operand.vmem [shape: f32[8,256], index: 4, kind: input, shape index: {}]   ;;  %s3097_s5 = inlined_call_operand.hbm [shape: f32[8,72], index: 5, kind: input, shape index: {}]   ;;  %s3098_s6 = inlined_call_operand.vmem [shape: f32[8,1], index: 6, kind: input, shape index: {}]   ;;  %s3099_s7 = inlined_call_operand.vmem [shape: f32[8,1], index: 7, kind: input, shape index: {}]   ;;  %s3100_s8 = inlined_call_operand.hbm [shape: f32[8,72], index: 8, kind: input, shape index: {}]   ;;  %s3101_s9 = inlined_call_operand.vmem [shape: f32[8,1], index: 9, kind: input, shape index: {}]   ;;  %s3102_s10 = inlined_call_operand.vmem [shape: f32[8,1], index: 10, kind: input, shape index: {}]   ;;  %s3103_s11 = inlined_call_operand.vmem [shape: f32[4,72], index: 11, kind: input, shape index: {}]   ;;  %s3104_s12 = inlined_call_operand.vmem [shape: f32[4,1], index: 12, kind: input, shape index: {}]   ;;  %s3105_s13 = inlined_call_operand.vmem [shape: f32[4,1], index: 13, kind: input, shape index: {}]   ;;  %s3106_s14 = inlined_call_operand.vmem [shape: f32[4,36], index: 14, kind: input, shape index: {}]   ;;  %s3107_s15 = inlined_call_operand.vmem [shape: f32[4,1], index: 15, kind: input, shape index: {}]   ;;  %s3108_s16 = inlined_call_operand.vmem [shape: f32[4,1], index: 16, kind: input, shape index: {}]   ;;  %s3109_s17 = inlined_call_operand.vmem [shape: f32[4,32], index: 17, kind: input, shape index: {}]   ;;  %s3110_s18 = inlined_call_operand.vmem [shape: f32[4,1], index: 18, kind: input, shape index: {}]   ;;  %s3111_s19 = inlined_call_operand.hbm [shape: f32[2,4,256], index: 19, kind: output, shape index: {}]  }
   0x1   :  { %3135 = sst [smem:[#allocation21_spill]] %s3092_s0 }
   0x2   :  { %3136 = sst [smem:[#allocation22_spill]] %s3093_s1 }
   0x3   :  { %3137 = sst [smem:[#allocation23_spill]] %s3094_s2 }
   0x4   :  { %3138 = sst [smem:[#allocation24_spill]] %s3095_s3 }
   0x5   :  { %3139 = sst [smem:[#allocation25_spill]] %s3097_s5 }
   0x6   :  { %3140 = sst [smem:[#allocation26_spill]] %s3100_s8 }
   0x7   :  { %3141 = sst [smem:[#allocation27_spill]] %s3110_s18 }
   0x8   :  { %3142 = sst [smem:[#allocation28_spill]] %s3111_s19 }
   0x9   :  { %24 = vsyncpa [#allocation3], 0 }
   0xa   :  { %26 = vsyncpa [#allocation3 + $0x1], 0 }
   0xb   :  { %27 = vsyncpa [#allocation6], 0 }
   0xc   :  { %28 = vsyncpa [#allocation9], 0 }
   0xd   :  { %29 = vsyncpa [#allocation4], 0 }
   0xe   :  { %31 = vsyncpa [#allocation4 + $0x1], 0  ;;  %s2449_s0 = smov 0   ;;  %s2451_s30 = smov 0  }
   0xf   :  { %s2453_s20 = smov 0   ;;  %s2455_s21 = smov 0  }
  0x10 LB: > { %3143 = sst [smem:[#allocation15_spill]] %s2321_s0  ;;  %s2473_s24 = sadd.s32 4294967295, %s2333_s21   ;;  %s2333_s21 = sphi %s2455_s21, %s3196_s21   ;;  %s2329_s20 = sphi %s2453_s20, %s3198_s20   ;;  %s2325_s30 = sphi %s2451_s30, %s3200_s30   ;;  %s2321_s0 = sphi %s2449_s0, %s3199_s0  }
  0x11   : > { %3144 = sst [smem:[#allocation16_spill]] %s2329_s20  ;;  %p1954_p0 = scmp.ge.s32.totalorder %s2333_s21, 1 }
  0x12   : > { %s3145_s2 = sld [smem:[#allocation24_spill]]  ;;  %p58_p1 = scmp.eq.s32.totalorder %s2473_s24, 0 }
  0x13   : > { %p482_p2 = scmp.lt.s32.totalorder %s2333_s21, 3  ;;  %s2335_s3 = smov [#allocation5]  }
  0x14   : > { %s495_s26 = sshll.u32 %s2335_s3, 4  ;;  %s3147_s5 = sld [smem:[#allocation25_spill]]  ;;  %s496_s26 = int_to_ptr.vmem [resolvable:$true] %s495_s26 }
  0x15   : > { %p2478_p3 = pnand %p1954_p0, %p482_p2  ;;  %s3149_s8 = sld [smem:[#allocation26_spill]] }
  0x16   : > { %s2336_s19 = smov [#allocation7]   ;;  %s2337_s28 = smov 256  }
  0x17   : > { %p2028_p4 = pneg %p2478_p3  ;;  %s513_s27 = sshll.u32 %s2336_s19, 4  ;;  %s514_s27 = int_to_ptr.vmem [resolvable:$true] %s513_s27 }
  0x18   : > { %s493_s23 = sshll.u32 %s3145_s2, 4  ;;  %s2339_s22 = smov [#allocation8]   ;;  %s494_s23 = int_to_ptr.hbm [resolvable:$true] %s493_s23 }
  0x19   : > { %p2490_p6 = pnand %p2028_p4, %p58_p1  ;;  %s531_s2 = sshll.u32 %s2339_s22, 4  ;;  %s532_s2 = int_to_ptr.vmem [resolvable:$true] %s531_s2 }
  0x1a   : > { %s511_s29 = sshll.u32 %s3147_s5, 4  ;;  %s2338_s5 = smov 16   ;;  %s512_s29 = int_to_ptr.hbm [resolvable:$true] %s511_s29 }
  0x1b   : > { %s529_s3 = sshll.u32 %s3149_s8, 4  ;;  %s1953_s19 = sadd.s32 4294967294, %s2333_s21   ;;  %s530_s3 = int_to_ptr.hbm [resolvable:$true] %s529_s3 }
  0x1c   : > { %2031 = dma.hbm_to_vmem [thread:$0]  (!%p2490_p6), %s494_s23, 2048, %s496_s26, [#allocation6], %s2337_s28, %s2337_s28, %s2338_s5  }
  0x1d   : > { %2034 = dma.hbm_to_vmem [thread:$0]  (!%p2490_p6), %s512_s29, 128, %s514_s27, [#allocation6]  }
  0x1e   : > { %2037 = dma.hbm_to_vmem [thread:$0]  (!%p2490_p6), %s530_s3, 128, %s532_s2, [#allocation9]  }
  0x1f   : > { %s2505_s8 = sadd.s32 1, %s2333_s21   ;;  %s44_s18 = sadd.s32 1, %s2329_s20 }
  0x20   : > { %3150 = sst [smem:[#allocation17_spill]] %s2505_s8  ;;  %s41_s5 = ssub.s32 %s2333_s21, %s2505_s8 }
  0x21   : > { %p51_p7 = scmp.ne.s32.totalorder %s2329_s20, %s2325_s30  ;;  %p42_p8 = scmp.eq.s32.totalorder %s41_s5, 0 }
  0x22   : > { %p52_p9 = scmp.eq.s32.totalorder %s2333_s21, 0  ;;  %p57_p10 = scmp.ne.s32.totalorder %s2325_s30, %s2321_s0 }
  0x23   : > { %p469_p11 = scmp.eq.s32.totalorder %s2473_s24, 1  ;;  %p475_p0 = scmp.eq.s32.totalorder %s1953_s19, 1 }
  0x24   : > { %s2517_s23 = scalar_select %p42_p8, %s2329_s20, %s44_s18  }
  0x25   : > { %p2521_p12 = por %p58_p1, %p57_p10  ;;  %p2525_p13 = por %p469_p11, %p51_p7 }
  0x26   : > { %3151 = sst [smem:[#allocation18_spill]] %s2517_s23  ;;  %p53_p2 = por %p52_p9, %p51_p7 }
  0x27   : > { %s3153_s29 = scalar_select %p2525_p13, 1, 0 }
  0x28   : > { %s572_s1 = sand.u32 1, %s2329_s20   ;;  %p2530_p4 = por %p475_p0, %p57_p10 }
  0x29   : > { %3154 = sst [smem:[#allocation19_spill]] %s3153_s29  ;;  %p2049_p6 = scmp.lt.s32.totalorder %s2333_s21, 2 }
  0x2a   : > { %s3155_s3 = scalar_select %p2530_p4, 1, 0 }
  0x2b   : > { %s1959_s27 = sshll.u32 %s572_s1, 2  ;;  %s1960_s18 = sshll.u32 %s2333_s21, 2 }
  0x2c   : > { %3156 = sst [smem:[#allocation20_spill]] %s3155_s3  ;;  %s576_s8 = scalar_lea.vmem [#allocation2], %s1959_s27 }
  0x2d   : > { %s3157_s2 = sld [smem:[#allocation21_spill]]  ;;  %s584_s0 = sshll.u32 %s576_s8, 4  ;;  %s585_s0 = int_to_ptr.vmem [resolvable:$true] %s584_s0 }
  0x2e   : > { %p2539_p8 = pnand %p2049_p6, %p53_p2  ;;  %s573_s20 = scalar_lea.sflag [#allocation3], %s572_s1 }
  0x30   : > { %p2233_p9 = pneg %p2539_p8 }
  0x33   : > { %s580_s5 = scalar_lea.hbm %s3157_s2, %s1960_s18  ;;  %s2236_s8 = scalar_lea.hbm %s3157_s2, 8 }
  0x34   : > { %s582_s23 = sshll.u32 %s580_s5, 4  ;;  %s583_s23 = int_to_ptr.hbm [resolvable:$true] %s582_s23 }
  0x35   : > { %s2229_s29 = sshra.s32 %s583_s23, 4  ;;  %s2230_s29 = int_to_ptr.hbm [resolvable:$true] %s2229_s29 }
  0x36   : > { %s2231_s3 = scalar_lea.hbm %s2230_s29, 4  ;;  %p2237_p0 = scmp.lt.s32.totalorder %s2230_s29, %s3157_s2 }
  0x37   : > { %p2232_p7 = scmp.ne.s32.totalorder %s2230_s29, %s2231_s3  ;;  %p2238_p2 = scmp.lt.s32.totalorder %s2236_s8, %s2231_s3 }
  0x39   : > { %p2234_p10 = pnand %p2233_p9, %p2232_p7  ;;  %p2239_p6 = por %p2238_p2, %p2237_p0 }
  0x3b   : > { %p2235_p11 = pneg %p2234_p10 }
  0x3d   : > { %p2240_p5 = pnand %p2239_p6, %p2235_p11 }
  0x3f   : > { %2243 = shalt.err (!%p2240_p5)
}
  0x40   : > { %2041 = dma.hbm_to_vmem [thread:$0]  (!%p2539_p8), %s583_s23, 64, %s585_s0, %s573_s20  }
  0x41   : > { %607 = sbr.rel (%p2478_p3) target bundleno = 2658 (0xa62), region = 96  ;;  %s2556_s1 = sand.u32 (!%p2478_p3), 1, %s2325_s30  }
  0x42   : > { %s1962_s5 = sshll.u32 (!%p2478_p3), %s2556_s1, 2  ;;  %s610_s18 = scalar_lea.sflag (!%p2478_p3), [#allocation3], %s2556_s1 }
  0x43   : > { %s2560_s28 = scalar_lea.vmem (!%p2478_p3), [#allocation2], %s1962_s5 }
  0x46   : > { %2304 = dma.done.wait (%p2521_p12), %s610_s18, 64  }
  0x47   : > { %2306 = vsyncadd (%p2521_p12), %s610_s18, 4294967232 }
  0x48   : > { %2308 = dma.done.wait (%p58_p1), [#allocation6], 2176  }
  0x49   : > { %2310 = vsyncadd (%p58_p1), [#allocation6], 4294965120 }
  0x4a   : > { %2312 = dma.done.wait (%p58_p1), [#allocation9], 128  }
  0x4b   : > { %2314 = vsyncadd (%p58_p1), [#allocation9], 4294967168  ;;  %v717_v0 = vld [vmem:[#allocation5 + $0x70] sm:$0xff]  ;;  %v715_v1 = vld [vmem:[#allocation5 + $0x60] sm:$0xff]  ;;  %vm719_vm0 = vcmask 523264   ;;  %p692_p1 = scmp.lt.s32.totalorder %s2473_s24, 1  ;;  %v784_v28 = vlaneseq }
  0x4c   : > { %731 = vmatpush.msra.mxu0 %v717_v0  ;;  %v718_v2 = vld [vmem:[#allocation5 + $0x78] sm:$0xff]  ;;  %v713_v3 = vld [vmem:[#allocation5 + $0x50] sm:$0xff]  ;;  %v716_v4 = vld [vmem:[#allocation5 + $0x68] sm:$0xff]  ;;  %s3159_s26 = sld [smem:[#allocation22_spill]]  ;;  %vm3125_vm1 = vcmask 1043456   ;;  %s3131_s3 = smov 113  }
  0x4d   : > { %751 = vmatpush.msra.mxu1 %v718_v2  ;;  %v714_v5 = vld [vmem:[#allocation5 + $0x58] sm:$0xff]  ;;  %v711_v6 = vld [vmem:[#allocation5 + $0x40] sm:$0xff]  ;;  %v712_v7 = vld [vmem:[#allocation5 + $0x48] sm:$0xff]  ;;  %s2577_s0 = scalar_select %p692_p1, %s2473_s24, 1  ;;  %v2621_v30 = vand.u32 127, %v784_v28  ;;  %vm3126_vm10 = vcmask 588800  }
  0x4e   : > { %732 = vmatpush.msra.mxu0 %v715_v1  ;;  %v709_v8 = vld [vmem:[#allocation5 + $0x30] sm:$0xff]  ;;  %v710_v9 = vld [vmem:[#allocation5 + $0x38] sm:$0xff]  ;;  %v707_v10 = vld [vmem:[#allocation5 + $0x20] sm:$0xff]  ;;  %s2341_s19 = smov 112   ;;  %s2342_s8 = smov 111  }
  0x4f   : > { %752 = vmatpush.msra.mxu1 %v716_v4  ;;  %v708_v11 = vld [vmem:[#allocation5 + $0x28] sm:$0xff]  ;;  %v705_v12 = vld [vmem:[#allocation5 + $0x10] sm:$0xff]  ;;  %v706_v13 = vld [vmem:[#allocation5 + $0x18] sm:$0xff]  ;;  %s1986_s20 = sshll.u32 %s2577_s0, 3  ;;  %s3133_s27 = smov 1   ;;  %vm852_vm2 = vcmp.lt.s32.totalorder %v2621_v30, 112 }
  0x50   : > { %733 = vmatpush.msra.mxu0 %v713_v3  ;;  %v703_v14 = vld [vmem:[#allocation5] sm:$0xff]  ;;  %v702_v15 = vld [vmem:[%s2560_s28] sm:$0xf]  ;;  %v704_v16 = vld [vmem:[#allocation5 + $0x8] sm:$0xff]  ;;  %s3127_s22 = smov 127   ;;  %s3129_s5 = smov 15  }
  0x51   : > { %753 = vmatpush.msra.mxu1 %v714_v5  ;;  %s3121_s18 = smov 17   ;;  %s3123_s28 = smov 16   ;;  %v2626_v32 = vld [vmem:[%s3096_s4] sm:$0xff]  ;;  %v2631_v33 = vld [vmem:[%s3096_s4 + $0x8] sm:$0xff]  ;;  %vm863_vm3 = vcmp.lt.s32.totalorder %v2621_v30, 111  ;;  %vm841_vm4 = vcmp.lt.s32.totalorder %v2621_v30, 113 }
  0x52   : > { %734 = vmatpush.msra.mxu0 %v711_v6  ;;  %s696_s29 = scalar_lea.vmem %s3159_s26, %s1986_s20  ;;  %v2636_v34 = vperm.slane %v2626_v32, 7  ;;  %v2639_v35 = vperm.slane %v2631_v33, 7  ;;  %v2643_v38 = vperm.slane %v2626_v32, 6  ;;  %v2646_v39 = vperm.slane %v2631_v33, 6 }
  0x53   : > { %754 = vmatpush.msra.mxu1 %v712_v7  ;;  %v763_v17 = vld [vmem:[%s696_s29] sm:$0xff]  ;;  %v2659_v46 = vperm.slane %v2626_v32, 5  ;;  %v2662_v47 = vperm.slane %v2631_v33, 5  ;;  %vm830_vm5 = vcmp.lt.s32.totalorder %v2621_v30, 127  ;;  %v2674_v55 = vperm.slane %v2626_v32, 4 }
  0x54   : > { %735 = vmatpush.msra.mxu0 %v709_v8  ;;  %765 = vst [vmem:[#allocation1] ss:$2 sm:$0xff] %v763_v17  ;;  %v2677_v56 = vperm.slane %v2631_v33, 4  ;;  %vm808_vm6 = vcmp.lt.s32.totalorder %v2621_v30, 15  ;;  %vm819_vm7 = vcmp.lt.s32.totalorder %v2621_v30, 1  ;;  %v2690_v63 = vperm.slane %v2626_v32, 3 }
  0x55   : > { %755 = vmatpush.msra.mxu1 %v710_v9  ;;  %v2693_v0 = vperm.slane %v2631_v33, 3  ;;  %v2696_v4 = vperm.slane %v2626_v32, 2  ;;  %v2699_v5 = vperm.slane %v2631_v33, 2  ;;  %vm797_vm8 = vcmp.lt.s32.totalorder %v2621_v30, 16 }
  0x56   : > { %736 = vmatpush.msra.mxu0 %v707_v10  ;;  %vm786_vm9 = vcmp.lt.s32.totalorder %v2621_v30, 17 }
  0x57   : > { %756 = vmatpush.msra.mxu1 %v708_v11 }
  0x58   : > { %737 = vmatpush.msra.mxu0 %v705_v12 }
  0x59   : > { %757 = vmatpush.msra.mxu1 %v706_v13 }
  0x5a   : > { %738 = vmatpush.msra.mxu0 %v703_v14  ;;  %v2715_v14 = vperm.slane %v2626_v32, 1 }
  0x5b   : > { %1969 = vmatmul.msk.f32.vlgmr.msra.gmra.mxu0 %vm719_vm0, %v702_v15  ;;  %758 = vmatpush.msra.mxu1 %v704_v16  ;;  %v766_v19 = vld.sshfl [vmem:[#allocation1] sm:$0xff pattern:$0x75316420]  ;;  %v767_v24 = vld.sshfl [vmem:[#allocation1 + $0x8] sm:$0xff pattern:$0x75316420] }
  0x5c   : > { %1970 = vmatmul.msk.f32.vlgmr.msra.gmra.mxu1 %vm719_vm0, %v702_v15  ;;  %v2718_v15 = vperm.slane %v2631_v33, 1 }
  0xd8   : > { %v740_v18 = vpop.f32.mrf.mxu0 }
  0xd9   : > { %v772_v20 = vrot.slane %v740_v18, 4  ;;  %v760_v21 = vpop.f32.mrf.mxu1 }
  0xda   : > { %v773_v23 = vrot.slane %v760_v21, 4 }
  0xdb   : > { %v2584_v22 = vsel %vm3125_vm1, %v766_v19, %v772_v20 }
  0xdc   : > { %837 = vrot.lane.b32.xlu2 %v2584_v22, %s3131_s3  ;;  %848 = vrot.lane.b32.xlu1 %v2584_v22, %s2341_s19  ;;  %v2593_v25 = vsel %vm3125_vm1, %v767_v24, %v773_v23  ;;  %v2728_v23 = vperm.slane %v2626_v32, 0  ;;  %v2731_v24 = vperm.slane %v2631_v33, 0 }
  0xdd   : > { %859 = vrot.lane.b32.xlu0 %v2584_v22, %s2342_s8 }
  0xe4   : > { %839 = vrot.lane.b32.xlu2 %v2593_v25, %s3131_s3  ;;  %850 = vrot.lane.b32.xlu1 %v2593_v25, %s2341_s19 }
  0xe5   : > { %861 = vrot.lane.b32.xlu0 %v2593_v25, %s2342_s8 }
  0xec   : > { %815 = vrot.lane.b32.xlu2 %v2584_v22, %s3133_s27  ;;  %828 = vrot.lane.b32.xlu1 %v2593_v25, %s3127_s22 }
  0xed   : > { %826 = vrot.lane.b32.xlu0 %v2584_v22, %s3127_s22 }
  0xf4   : > { %806 = vrot.lane.b32.xlu2 %v2593_v25, %s3129_s5  ;;  %804 = vrot.lane.b32.xlu1 %v2584_v22, %s3129_s5 }
  0xf5   : > { %817 = vrot.lane.b32.xlu0 %v2593_v25, %s3133_s27 }
  0xfc   : > { %780 = vrot.lane.b32.xlu2 %v2584_v22, %s3121_s18  ;;  %795 = vrot.lane.b32.xlu1 %v2593_v25, %s3123_s28 }
  0xfd   : > { %793 = vrot.lane.b32.xlu0 %v2584_v22, %s3123_s28 }
 0x105   : > { %782 = vrot.lane.b32.xlu0 %v2593_v25, %s3121_s18 }
 0x136   : > { %v838_v26 = vpop.permute.xlu2 %837 }
 0x13e   : > { %v840_v31 = vpop.permute.xlu2 %839 }
 0x13f   : > { %v842_v48 = vsel %vm841_vm4, %v838_v26, %v840_v31  ;;  %v843_v49 = vsel %vm841_vm4, %v840_v31, %v838_v26 }
 0x140   : > { %v846_v53 = vmul.f32 %v2659_v46, %v842_v48  ;;  %v847_v54 = vmul.f32 %v2662_v47, %v843_v49  ;;  %v915_v48 = vld [vmem:[%s3099_s7] sm:$0xff] }
 0x146   : > { %v816_v52 = vpop.permute.xlu2 %815 }
 0x14e   : > { %v849_v27 = vpop.permute.xlu1 %848  ;;  %v807_v2 = vpop.permute.xlu2 %806 }
 0x14f   : > { %v860_v29 = vpop.permute.xlu0 %859 }
 0x156   : > { %v851_v36 = vpop.permute.xlu1 %850  ;;  %v781_v26 = vpop.permute.xlu2 %780 }
 0x157   : > { %v862_v37 = vpop.permute.xlu0 %861  ;;  %v853_v40 = vsel %vm852_vm2, %v849_v27, %v851_v36  ;;  %v854_v41 = vsel %vm852_vm2, %v851_v36, %v849_v27 }
 0x158   : > { %v864_v42 = vsel %vm863_vm3, %v860_v29, %v862_v37  ;;  %v865_v43 = vsel %vm863_vm3, %v862_v37, %v860_v29  ;;  %v857_v50 = vmul.f32 %v2643_v38, %v853_v40  ;;  %v858_v51 = vmul.f32 %v2646_v39, %v854_v41  ;;  %v779_v37 = vld [vmem:[#allocation7] sm:$0xff] }
 0x159   : > { %v868_v44 = vmul.f32 %v2636_v34, %v864_v42  ;;  %v869_v45 = vmul.f32 %v2639_v35, %v865_v43 }
 0x15b   : > { %881 = vmatpush.msra.mxu2 %v868_v44  ;;  %901 = vmatpush.msra.mxu3 %v869_v45  ;;  %v2348_v44 = vmov 0   ;;  %v914_v45 = vld [vmem:[%s3098_s6] sm:$0xff] }
 0x15c   : > { %2100 = vset.pattern.permute.xlu0 %v2348_v44  ;;  %2101 = vset.pattern.permute.xlu1 %v2348_v44 }
 0x15d   : > { %882 = vmatpush.msra.mxu2 %v857_v50  ;;  %902 = vmatpush.msra.mxu3 %v858_v51 }
 0x15e   : > { %v829_v57 = vpop.permute.xlu1 %828  ;;  %2102 = vset.pattern.permute.xlu2 %v2348_v44  ;;  %963 = vperm.xlu0 %2100, %v914_v45  }
 0x15f   : > { %v827_v58 = vpop.permute.xlu0 %826  ;;  %883 = vmatpush.msra.mxu2 %v846_v53  ;;  %903 = vmatpush.msra.mxu3 %v847_v54 }
 0x160   : > { %v831_v59 = vsel %vm830_vm5, %v827_v58, %v829_v57  ;;  %v832_v60 = vsel %vm830_vm5, %v829_v57, %v827_v58 }
 0x161   : > { %v835_v61 = vmul.f32 %v2674_v55, %v831_v59  ;;  %v836_v62 = vmul.f32 %v2677_v56, %v832_v60 }
 0x163   : > { %884 = vmatpush.msra.mxu2 %v835_v61  ;;  %904 = vmatpush.msra.mxu3 %v836_v62 }
 0x165   : > { %885 = vmatpush.msra.mxu2 %v2584_v22  ;;  %905 = vmatpush.msra.mxu3 %v2593_v25 }
 0x166   : > { %v805_v1 = vpop.permute.xlu1 %804  ;;  %970 = vperm.xlu0 %2100, %v915_v48  }
 0x167   : > { %v818_v3 = vpop.permute.xlu0 %817  ;;  %v809_v6 = vsel %vm808_vm6, %v805_v1, %v807_v2  ;;  %v810_v7 = vsel %vm808_vm6, %v807_v2, %v805_v1 }
 0x168   : > { %v820_v8 = vsel %vm819_vm7, %v816_v52, %v818_v3  ;;  %v821_v9 = vsel %vm819_vm7, %v818_v3, %v816_v52  ;;  %v813_v12 = vmul.f32 %v2696_v4, %v810_v7  ;;  %v814_v13 = vmul.f32 %v2699_v5, %v809_v6 }
 0x169   : > { %v824_v10 = vmul.f32 %v2690_v63, %v821_v9  ;;  %v825_v11 = vmul.f32 %v2693_v0, %v820_v8 }
 0x16b   : > { %886 = vmatpush.msra.mxu2 %v824_v10  ;;  %906 = vmatpush.msra.mxu3 %v825_v11 }
 0x16d   : > { %887 = vmatpush.msra.mxu2 %v813_v12  ;;  %907 = vmatpush.msra.mxu3 %v814_v13 }
 0x16e   : > { %v796_v16 = vpop.permute.xlu1 %795 }
 0x16f   : > { %v794_v17 = vpop.permute.xlu0 %793 }
 0x170   : > { %v798_v18 = vsel %vm797_vm8, %v794_v17, %v796_v16  ;;  %v799_v19 = vsel %vm797_vm8, %v796_v16, %v794_v17 }
 0x171   : > { %v802_v20 = vmul.f32 %v2715_v14, %v799_v19  ;;  %v803_v21 = vmul.f32 %v2718_v15, %v798_v18 }
 0x173   : > { %888 = vmatpush.msra.mxu2 %v802_v20  ;;  %908 = vmatpush.msra.mxu3 %v803_v21 }
 0x177   : > { %v783_v27 = vpop.permute.xlu0 %782 }
 0x178   : > { %v787_v28 = vsel %vm786_vm9, %v781_v26, %v783_v27  ;;  %v788_v29 = vsel %vm786_vm9, %v783_v27, %v781_v26 }
 0x179   : > { %v791_v31 = vmul.f32 %v2728_v23, %v788_v29  ;;  %v792_v36 = vmul.f32 %v2731_v24, %v787_v28 }
 0x17b   : > { %889 = vmatpush.msra.mxu2 %v791_v31  ;;  %909 = vmatpush.msra.mxu3 %v792_v36 }
 0x17c   : > { %1971 = vmatmul.msk.f32.vlgmr.msra.gmra.mxu2 %vm3126_vm10, %v779_v37  ;;  %1972 = vmatmul.msk.f32.vlgmr.msra.gmra.mxu3 %vm3126_vm10, %v779_v37 }
 0x1d0   : > { %v964_v13 = vpop.permute.xlu0 %963 }
 0x1d8   : > { %v971_v28 = vpop.permute.xlu0 %970 }
 0x1ff   : > { %v891_v32 = vpop.f32.mrf.mxu2  ;;  %v911_v33 = vpop.f32.mrf.mxu3 }
 0x200   : > { %v916_v40 = vadd.f32 %v911_v33, %v891_v32  ;;  %v927_v41 = vmul.f32 %v891_v32, %v891_v32  ;;  %v928_v42 = vmul.f32 %v911_v33, %v911_v33 }
 0x202   : > { %917 = vadd.xlane.f32.xlu1 %v916_v40  ;;  %v929_v43 = vadd.f32 %v928_v42, %v927_v41 }
 0x204   : > { %930 = vadd.xlane.f32.xlu2 %v929_v43 }
 0x275   : > { %v918_v49 = vpop.xlane.xlu1 %917 }
 0x276   : > { %v919_v50 = vrot.slane %v918_v49, 4 }
 0x277   : > { %v931_v51 = vpop.xlane.xlu2 %930 }
 0x278   : > { %v920_v52 = vadd.f32 %v919_v50, %v918_v49  ;;  %v932_v53 = vrot.slane %v931_v51, 4 }
 0x27a   : > { %v921_v54 = vrot.slane %v920_v52, 2  ;;  %v933_v57 = vadd.f32 %v932_v53, %v931_v51 }
 0x27c   : > { %v934_v58 = vrot.slane %v933_v57, 2  ;;  %v922_v59 = vadd.f32 %v921_v54, %v920_v52 }
 0x27e   : > { %v923_v60 = vrot.slane %v922_v59, 1  ;;  %v935_v61 = vadd.f32 %v934_v58, %v933_v57 }
 0x280   : > { %v924_v62 = vadd.f32 %v923_v60, %v922_v59  ;;  %v936_v1 = vrot.slane %v935_v61, 1 }
 0x282   : > { %1988 = vpush %v924_v62  ;;  %v937_v2 = vadd.f32 %v936_v1, %v935_v61 }
 0x284   : > { %1990 = vpush %v937_v2 }
 0x2b3   : > { %s1989_s26 = spop %1988 }
 0x2b4   : > { %s926_s29 = smul.f32 0.00048828125, %s1989_s26 }
 0x2b5   : > { %s1991_s20 = spop %1990 }
 0x2b6   : > { %s940_s25 = smul.f32 %s926_s29, %s926_s29  ;;  %v942_v16 = vstv %s926_s29 }
 0x2b7   : > { %s939_s23 = smul.f32 0.00048828125, %s1991_s20  ;;  %v943_v17 = vsub.f32 %v891_v32, %v942_v16  ;;  %v944_v18 = vsub.f32 %v911_v33, %v942_v16 }
 0x2b9   : > { %s941_s18 = ssub.f32 %s939_s23, %s940_s25 }
 0x2bb   : > { %s945_s28 = sadd.f32 1e-05, %s941_s18  ;;  %s3160_s18 = smov 16  }
 0x2bd   : > { %v946_v3 = vstv %s945_s28  ;;  %s3161_s28 = smov 17  }
 0x2be   : > { %2103 = vrsqrt.f32 %v946_v3  ;;  %vm953_vm12 = vweird.f32 %v946_v3 }
 0x2c4   : > { %v2104_v6 = vpop.eup %2103 }
 0x2c5   : > { %v948_v7 = vmul.f32 %v2104_v6, %v946_v3  ;;  %vm954_vm11 = vweird.f32 %v2104_v6 }
 0x2c6   : > { %vm955_vm13 = vmor %vm953_vm12, %vm954_vm11 }
 0x2c7   : > { %v949_v8 = vmul.f32 %v2104_v6, %v948_v7 }
 0x2c9   : > { %v950_v9 = vmul.f32 0.5, %v949_v8 }
 0x2cb   : > { %v951_v10 = vsub.f32 1.5, %v950_v9 }
 0x2cd   : > { %v952_v11 = vmul.f32 %v2104_v6, %v951_v10 }
 0x2cf   : > { %v956_v12 = vsel %vm955_vm13, %v2104_v6, %v952_v11 }
 0x2d0   : > { %1992 = vpush %v956_v12 }
 0x301   : > { %s1993_s26 = spop %1992 }
 0x302   : > { %v958_v19 = vstv %s1993_s26 }
 0x303   : > { %v959_v20 = vmul.f32 %v958_v19, %v943_v17  ;;  %v960_v21 = vmul.f32 %v958_v19, %v944_v18 }
 0x305   : > { %v966_v26 = vmul.f32 %v964_v13, %v959_v20  ;;  %v967_v27 = vmul.f32 %v964_v13, %v960_v21 }
 0x307   : > { %v2747_v29 = vadd.f32 %v971_v28, %v966_v26  ;;  %v2749_v31 = vadd.f32 %v971_v28, %v967_v27 }
 0x309   : > { %v2752_v36 = vmul.f32 0.70710677, %v2747_v29  ;;  %v2755_v37 = vmul.f32 0.70710677, %v2749_v31 }
 0x30b   : > { %v979_v32 = vand.u32 2147483647, %v2752_v36  ;;  %v980_v33 = vand.u32 2147483647, %v2755_v37 }
 0x30d   : > { %v981_v40 = vmul.f32 0.3275911, %v979_v32  ;;  %v982_v41 = vmul.f32 0.3275911, %v980_v33  ;;  %v1033_v7 = vsub.f32 0.0, %v979_v32  ;;  %v1034_v10 = vsub.f32 0.0, %v980_v33 }
 0x30f   : > { %v983_v42 = vadd.f32 1.0, %v981_v40  ;;  %v984_v43 = vadd.f32 1.0, %v982_v41  ;;  %v1035_v16 = vmul.f32 %v1033_v7, %v979_v32  ;;  %v1036_v18 = vmul.f32 %v1034_v10, %v980_v33 }
 0x311   : > { %2105 = vrcp.f32 %v983_v42  ;;  %v996_v51 = vand.u32 2147483648, %v983_v42  ;;  %v994_v54 = vand.u32 2147483647, %v983_v42  ;;  %v1011_v57 = vand.u32 2147483648, %v984_v43 }
 0x312   : > { %2107 = vrcp.f32 %v984_v43  ;;  %v1009_v59 = vand.u32 2147483647, %v984_v43  ;;  %vm990_vm0 = vweird.f32 %v983_v42  ;;  %vm1005_vm12 = vweird.f32 %v984_v43 }
 0x313   : > { %v997_v61 = vor.u32 1.1754944e-38, %v996_v51  ;;  %vm995_vm13 = vcmp.eq.f32.partialorder %v994_v54, 8.507059e+37  ;;  %v1012_v2 = vor.u32 1.1754944e-38, %v1011_v57  ;;  %v1037_v26 = vmul.f32 1.442695, %v1035_v16 }
 0x314   : > { %vm1010_vm10 = vcmp.eq.f32.partialorder %v1009_v59, 8.507059e+37  ;;  %v1039_v28 = vmul.f32 1.442695, %v1036_v18 }
 0x315   : > { %2109 = vpow2.f32 %v1037_v26 }
 0x316   : > { %2111 = vpow2.f32 %v1039_v28 }
 0x317   : > { %v2106_v44 = vpop.eup %2105 }
 0x318   : > { %v2108_v45 = vpop.eup %2107  ;;  %v986_v48 = vmul.f32 %v2106_v44, %v983_v42  ;;  %vm991_vm14 = vweird.f32 %v2106_v44 }
 0x319   : > { %v1001_v49 = vmul.f32 %v2108_v45, %v984_v43  ;;  %vm1006_vm15 = vweird.f32 %v2108_v45  ;;  %vm992_vm11 = vmor %vm990_vm0, %vm991_vm14  ;;  %vm3162_vm14 = vcmask 588800  }
 0x31a   : > { %v987_v50 = vsub.f32 1.0, %v986_v48  ;;  %vm1007_vm1 = vmor %vm1005_vm12, %vm1006_vm15 }
 0x31b   : > { %v1002_v52 = vsub.f32 1.0, %v1001_v49  ;;  %vm3163_vm15 = vmmov %vm3162_vm14 }
 0x31c   : > { %v988_v53 = vmul.f32 %v2106_v44, %v987_v50  ;;  %v2110_v50 = vpop.eup %2109 }
 0x31d   : > { %v1003_v58 = vmul.f32 %v2108_v45, %v1002_v52  ;;  %v2112_v51 = vpop.eup %2111 }
 0x31e   : > { %v989_v60 = vadd.f32 %v2106_v44, %v988_v53 }
 0x31f   : > { %v1004_v62 = vadd.f32 %v2108_v45, %v1003_v58 }
 0x320   : > { %v993_v1 = vsel %vm992_vm11, %v2106_v44, %v989_v60  ;;  %v975_v60 = vmul.f32 0.5, %v2747_v29  ;;  %v1163_v29 = vld [vmem:[%s3101_s9] sm:$0xff] }
 0x321   : > { %v998_v3 = vsel %vm995_vm13, %v997_v61, %v993_v1  ;;  %v1008_v6 = vsel %vm1007_vm1, %v2108_v45, %v1004_v62  ;;  %vm1045_vm1 = vcmp.ge.f32.partialorder %v2752_v36, 0.0  ;;  %v976_v1 = vmul.f32 0.5, %v2749_v31  ;;  %v1164_v31 = vld [vmem:[%s3102_s10] sm:$0xff] }
 0x322   : > { %v1013_v8 = vsel %vm1010_vm10, %v1012_v2, %v1008_v6  ;;  %v1015_v9 = vmul.f32 1.0614054, %v998_v3  ;;  %vm1046_vm10 = vcmp.ge.f32.partialorder %v2755_v37, 0.0 }
 0x323   : > { %v1016_v11 = vmul.f32 1.0614054, %v1013_v8 }
 0x324   : > { %v1017_v12 = vadd.f32 -1.4531521, %v1015_v9 }
 0x325   : > { %v1018_v13 = vadd.f32 -1.4531521, %v1016_v11 }
 0x326   : > { %v1019_v17 = vmul.f32 %v1017_v12, %v998_v3 }
 0x327   : > { %v1020_v19 = vmul.f32 %v1018_v13, %v1013_v8 }
 0x328   : > { %v1021_v20 = vadd.f32 1.4214138, %v1019_v17 }
 0x329   : > { %v1022_v21 = vadd.f32 1.4214138, %v1020_v19 }
 0x32a   : > { %v1023_v27 = vmul.f32 %v1021_v20, %v998_v3 }
 0x32b   : > { %v1024_v40 = vmul.f32 %v1022_v21, %v1013_v8 }
 0x32c   : > { %v1025_v41 = vadd.f32 -0.28449672, %v1023_v27 }
 0x32d   : > { %v1026_v42 = vadd.f32 -0.28449672, %v1024_v40 }
 0x32e   : > { %v1027_v43 = vmul.f32 %v1025_v41, %v998_v3 }
 0x32f   : > { %v1028_v44 = vmul.f32 %v1026_v42, %v1013_v8 }
 0x330   : > { %v1029_v45 = vadd.f32 0.2548296, %v1027_v43 }
 0x331   : > { %v1030_v48 = vadd.f32 0.2548296, %v1028_v44 }
 0x332   : > { %v1031_v49 = vmul.f32 %v1029_v45, %v998_v3 }
 0x333   : > { %v1032_v32 = vmul.f32 %v1030_v48, %v1013_v8 }
 0x334   : > { %v1041_v33 = vmul.f32 %v2110_v50, %v1031_v49 }
 0x335   : > { %v1042_v52 = vmul.f32 %v2112_v51, %v1032_v32 }
 0x336   : > { %v1043_v53 = vsub.f32 1.0, %v1041_v33 }
 0x337   : > { %v1044_v54 = vsub.f32 1.0, %v1042_v52 }
 0x338   : > { %v1047_v57 = vsub.f32 0.0, %v1043_v53 }
 0x339   : > { %v1048_v58 = vsub.f32 0.0, %v1044_v54 }
 0x33a   : > { %v1049_v59 = vsel %vm1045_vm1, %v1043_v53, %v1047_v57 }
 0x33b   : > { %v1050_v61 = vsel %vm1046_vm10, %v1044_v54, %v1048_v58  ;;  %v1051_v62 = vadd.f32 1.0, %v1049_v59 }
 0x33c   : > { %v1052_v2 = vadd.f32 1.0, %v1050_v61 }
 0x33d   : > { %v1053_v3 = vmul.f32 %v1051_v62, %v975_v60 }
 0x33e   : > { %v1054_v6 = vmul.f32 %v1052_v2, %v976_v1 }
 0x33f   : > { %1104 = vrot.lane.b32.xlu2 %v1053_v3, %s2341_s19  ;;  %1112 = vrot.lane.b32.xlu0 %v1053_v3, %s2342_s8 }
 0x340   : > { %1106 = vrot.lane.b32.xlu1 %v1054_v6, %s2341_s19 }
 0x347   : > { %1090 = vrot.lane.b32.xlu2 %v1054_v6, %s3127_s22  ;;  %1114 = vrot.lane.b32.xlu0 %v1054_v6, %s2342_s8 }
 0x348   : > { %1080 = vrot.lane.b32.xlu1 %v1053_v3, %s3133_s27 }
 0x34f   : > { %1072 = vrot.lane.b32.xlu2 %v1053_v3, %s3129_s5  ;;  %1096 = vrot.lane.b32.xlu0 %v1053_v3, %s3131_s3 }
 0x350   : > { %1074 = vrot.lane.b32.xlu1 %v1054_v6, %s3129_s5 }
 0x357   : > { %1066 = vrot.lane.b32.xlu2 %v1054_v6, %s3160_s18  ;;  %1098 = vrot.lane.b32.xlu0 %v1054_v6, %s3131_s3 }
 0x358   : > { %1056 = vrot.lane.b32.xlu1 %v1053_v3, %s3161_s28 }
 0x35f   : > { %1088 = vrot.lane.b32.xlu0 %v1053_v3, %s3127_s22 }
 0x367   : > { %1082 = vrot.lane.b32.xlu0 %v1054_v6, %s3133_s27 }
 0x36f   : > { %1064 = vrot.lane.b32.xlu0 %v1053_v3, %s3160_s18 }
 0x377   : > { %1058 = vrot.lane.b32.xlu0 %v1054_v6, %s3161_s28 }
 0x37f   : > { %1212 = vperm.xlu0 %2100, %v1163_v29  }
 0x387   : > { %1219 = vperm.xlu0 %2100, %v1164_v31  }
 0x399   : > { %v1105_v7 = vpop.permute.xlu2 %1104 }
 0x3a1   : > { %v1091_v40 = vpop.permute.xlu2 %1090 }
 0x3a9   : > { %v1073_v49 = vpop.permute.xlu2 %1072 }
 0x3b1   : > { %v1113_v36 = vpop.permute.xlu0 %1112  ;;  %v1067_v60 = vpop.permute.xlu2 %1066 }
 0x3b2   : > { %v1107_v37 = vpop.permute.xlu1 %1106 }
 0x3b3   : > { %v1108_v9 = vsel %vm852_vm2, %v1105_v7, %v1107_v37  ;;  %v1109_v10 = vsel %vm852_vm2, %v1107_v37, %v1105_v7 }
 0x3b4   : > { %v1110_v17 = vmul.f32 %v1108_v9, %v2643_v38  ;;  %v1111_v18 = vmul.f32 %v1109_v10, %v2646_v39 }
 0x3b9   : > { %v1115_v8 = vpop.permute.xlu0 %1114 }
 0x3ba   : > { %v1116_v11 = vsel %vm863_vm3, %v1113_v36, %v1115_v8  ;;  %v1117_v12 = vsel %vm863_vm3, %v1115_v8, %v1113_v36  ;;  %v1081_v41 = vpop.permute.xlu1 %1080  ;;  %v1055_v8 = vld [vmem:[#allocation8] sm:$0xff] }
 0x3bb   : > { %v1118_v13 = vmul.f32 %v1116_v11, %v2636_v34  ;;  %v1119_v16 = vmul.f32 %v1117_v12, %v2639_v35 }
 0x3bd   : > { %1130 = vmatpush.msrb.mxu0 %v1118_v13  ;;  %1150 = vmatpush.msrb.mxu1 %v1119_v16 }
 0x3bf   : > { %1131 = vmatpush.msrb.mxu0 %v1110_v17  ;;  %1151 = vmatpush.msrb.mxu1 %v1111_v18 }
 0x3c1   : > { %v1097_v19 = vpop.permute.xlu0 %1096 }
 0x3c2   : > { %v1075_v50 = vpop.permute.xlu1 %1074 }
 0x3c3   : > { %v1076_v51 = vsel %vm808_vm6, %v1073_v49, %v1075_v50  ;;  %v1077_v33 = vsel %vm808_vm6, %v1075_v50, %v1073_v49 }
 0x3c4   : > { %v1078_v58 = vmul.f32 %v1077_v33, %v2696_v4  ;;  %v1079_v59 = vmul.f32 %v1076_v51, %v2699_v5 }
 0x3c9   : > { %v1099_v20 = vpop.permute.xlu0 %1098 }
 0x3ca   : > { %v1100_v21 = vsel %vm841_vm4, %v1097_v19, %v1099_v20  ;;  %v1101_v26 = vsel %vm841_vm4, %v1099_v20, %v1097_v19 }
 0x3cb   : > { %v1102_v27 = vmul.f32 %v1100_v21, %v2659_v46  ;;  %v1103_v28 = vmul.f32 %v1101_v26, %v2662_v47 }
 0x3cd   : > { %1132 = vmatpush.msrb.mxu0 %v1102_v27  ;;  %1152 = vmatpush.msrb.mxu1 %v1103_v28 }
 0x3d1   : > { %v1089_v42 = vpop.permute.xlu0 %1088 }
 0x3d2   : > { %v1092_v43 = vsel %vm830_vm5, %v1089_v42, %v1091_v40  ;;  %v1093_v44 = vsel %vm830_vm5, %v1091_v40, %v1089_v42 }
 0x3d3   : > { %v1094_v45 = vmul.f32 %v1092_v43, %v2674_v55  ;;  %v1095_v48 = vmul.f32 %v1093_v44, %v2677_v56 }
 0x3d5   : > { %1133 = vmatpush.msrb.mxu0 %v1094_v45  ;;  %1153 = vmatpush.msrb.mxu1 %v1095_v48 }
 0x3d7   : > { %1134 = vmatpush.msrb.mxu0 %v1053_v3  ;;  %1154 = vmatpush.msrb.mxu1 %v1054_v6  ;;  %v1057_v6 = vpop.permute.xlu1 %1056 }
 0x3d9   : > { %v1083_v32 = vpop.permute.xlu0 %1082 }
 0x3da   : > { %v1084_v52 = vsel %vm819_vm7, %v1081_v41, %v1083_v32  ;;  %v1085_v53 = vsel %vm819_vm7, %v1083_v32, %v1081_v41 }
 0x3db   : > { %v1086_v54 = vmul.f32 %v1085_v53, %v2690_v63  ;;  %v1087_v57 = vmul.f32 %v1084_v52, %v2693_v0 }
 0x3dd   : > { %1135 = vmatpush.msrb.mxu0 %v1086_v54  ;;  %1155 = vmatpush.msrb.mxu1 %v1087_v57 }
 0x3df   : > { %1136 = vmatpush.msrb.mxu0 %v1078_v58  ;;  %1156 = vmatpush.msrb.mxu1 %v1079_v59 }
 0x3e1   : > { %v1065_v61 = vpop.permute.xlu0 %1064 }
 0x3e2   : > { %v1068_v62 = vsel %vm797_vm8, %v1065_v61, %v1067_v60  ;;  %v1069_v1 = vsel %vm797_vm8, %v1067_v60, %v1065_v61 }
 0x3e3   : > { %v1070_v2 = vmul.f32 %v1069_v1, %v2715_v14  ;;  %v1071_v3 = vmul.f32 %v1068_v62, %v2718_v15 }
 0x3e5   : > { %1137 = vmatpush.msrb.mxu0 %v1070_v2  ;;  %1157 = vmatpush.msrb.mxu1 %v1071_v3 }
 0x3e9   : > { %v1059_v29 = vpop.permute.xlu0 %1058 }
 0x3ea   : > { %v1060_v31 = vsel %vm786_vm9, %v1057_v6, %v1059_v29  ;;  %v1061_v36 = vsel %vm786_vm9, %v1059_v29, %v1057_v6 }
 0x3eb   : > { %v1062_v37 = vmul.f32 %v1061_v36, %v2728_v23  ;;  %v1063_v7 = vmul.f32 %v1060_v31, %v2731_v24 }
 0x3ed   : > { %1138 = vmatpush.msrb.mxu0 %v1062_v37  ;;  %1158 = vmatpush.msrb.mxu1 %v1063_v7 }
 0x3ee   : > { %1973 = vmatmul.msk.f32.vlgmr.msrb.gmra.mxu0 %vm3162_vm14, %v1055_v8  ;;  %1974 = vmatmul.msk.f32.vlgmr.msrb.gmra.mxu1 %vm3163_vm15, %v1055_v8 }
 0x3f1   : > { %v1213_v54 = vpop.permute.xlu0 %1212 }
 0x3f9   : > { %v1220_v3 = vpop.permute.xlu0 %1219 }
 0x46b   : > { %v1140_v9 = vpop.f32.mrf.mxu0  ;;  %v1160_v10 = vpop.f32.mrf.mxu1 }
 0x46c   : > { %v1165_v11 = vadd.f32 %v1160_v10, %v1140_v9  ;;  %v1176_v12 = vmul.f32 %v1140_v9, %v1140_v9  ;;  %v1177_v13 = vmul.f32 %v1160_v10, %v1160_v10 }
 0x46e   : > { %1166 = vadd.xlane.f32.xlu2 %v1165_v11  ;;  %v1178_v16 = vadd.f32 %v1177_v13, %v1176_v12 }
 0x470   : > { %1179 = vadd.xlane.f32.xlu1 %v1178_v16 }
 0x4e1   : > { %v1167_v17 = vpop.xlane.xlu2 %1166 }
 0x4e2   : > { %v1168_v18 = vrot.slane %v1167_v17, 4 }
 0x4e3   : > { %v1180_v19 = vpop.xlane.xlu1 %1179 }
 0x4e4   : > { %v1169_v20 = vadd.f32 %v1168_v18, %v1167_v17  ;;  %v1181_v21 = vrot.slane %v1180_v19, 4 }
 0x4e6   : > { %v1170_v26 = vrot.slane %v1169_v20, 2  ;;  %v1182_v27 = vadd.f32 %v1181_v21, %v1180_v19 }
 0x4e8   : > { %v1183_v28 = vrot.slane %v1182_v27, 2  ;;  %v1171_v40 = vadd.f32 %v1170_v26, %v1169_v20 }
 0x4ea   : > { %v1172_v41 = vrot.slane %v1171_v40, 1  ;;  %v1184_v42 = vadd.f32 %v1183_v28, %v1182_v27 }
 0x4ec   : > { %v1173_v43 = vadd.f32 %v1172_v41, %v1171_v40  ;;  %v1185_v44 = vrot.slane %v1184_v42, 1 }
 0x4ee   : > { %1994 = vpush %v1173_v43  ;;  %v1186_v45 = vadd.f32 %v1185_v44, %v1184_v42 }
 0x4f0   : > { %1996 = vpush %v1186_v45 }
 0x51f   : > { %s1995_s26 = spop %1994 }
 0x520   : > { %s1175_s29 = smul.f32 0.00048828125, %s1995_s26 }
 0x521   : > { %s1997_s20 = spop %1996 }
 0x522   : > { %s1189_s25 = smul.f32 %s1175_s29, %s1175_s29  ;;  %v1191_v57 = vstv %s1175_s29 }
 0x523   : > { %s1188_s23 = smul.f32 0.00048828125, %s1997_s20  ;;  %v1192_v58 = vsub.f32 %v1140_v9, %v1191_v57  ;;  %v1193_v59 = vsub.f32 %v1160_v10, %v1191_v57 }
 0x525   : > { %s1190_s22 = ssub.f32 %s1188_s23, %s1189_s25 }
 0x527   : > { %s1194_s5 = sadd.f32 1e-05, %s1190_s22  ;;  %s3164_s22 = smov 15  }
 0x529   : > { %v1195_v48 = vstv %s1194_s5  ;;  %s3165_s5 = smov 127  }
 0x52a   : > { %2113 = vrsqrt.f32 %v1195_v48  ;;  %vm1202_vm11 = vweird.f32 %v1195_v48 }
 0x530   : > { %v2114_v49 = vpop.eup %2113 }
 0x531   : > { %v1197_v50 = vmul.f32 %v2114_v49, %v1195_v48  ;;  %vm1203_vm0 = vweird.f32 %v2114_v49 }
 0x532   : > { %vm1204_vm12 = vmor %vm1202_vm11, %vm1203_vm0 }
 0x533   : > { %v1198_v32 = vmul.f32 %v2114_v49, %v1197_v50 }
 0x535   : > { %v1199_v51 = vmul.f32 0.5, %v1198_v32 }
 0x537   : > { %v1200_v33 = vsub.f32 1.5, %v1199_v51 }
 0x539   : > { %v1201_v52 = vmul.f32 %v2114_v49, %v1200_v33 }
 0x53b   : > { %v1205_v53 = vsel %vm1204_vm12, %v2114_v49, %v1201_v52 }
 0x53c   : > { %1998 = vpush %v1205_v53 }
 0x56d   : > { %s1999_s26 = spop %1998 }
 0x56e   : > { %v1207_v60 = vstv %s1999_s26 }
 0x56f   : > { %v1208_v61 = vmul.f32 %v1207_v60, %v1192_v58  ;;  %v1209_v62 = vmul.f32 %v1207_v60, %v1193_v59 }
 0x571   : > { %v1215_v1 = vmul.f32 %v1213_v54, %v1208_v61  ;;  %v1216_v2 = vmul.f32 %v1213_v54, %v1209_v62 }
 0x573   : > { %v1222_v6 = vadd.f32 %v1220_v3, %v1215_v1  ;;  %v1223_v29 = vadd.f32 %v1220_v3, %v1216_v2 }
 0x575   : > { %v2836_v31 = vadd.f32 %v1222_v6, %v2584_v22  ;;  %v2839_v36 = vadd.f32 %v1223_v29, %v2593_v25 }
 0x577   : > { %v2842_v37 = vmul.f32 0.70710677, %v2836_v31  ;;  %v2845_v7 = vmul.f32 0.70710677, %v2839_v36 }
 0x579   : > { %v1230_v8 = vand.u32 2147483647, %v2842_v37  ;;  %v1231_v9 = vand.u32 2147483647, %v2845_v7 }
 0x57b   : > { %v1232_v10 = vmul.f32 0.3275911, %v1230_v8  ;;  %v1233_v11 = vmul.f32 0.3275911, %v1231_v9  ;;  %v1284_v50 = vsub.f32 0.0, %v1230_v8  ;;  %v1285_v33 = vsub.f32 0.0, %v1231_v9 }
 0x57d   : > { %v1234_v12 = vadd.f32 1.0, %v1232_v10  ;;  %v1235_v13 = vadd.f32 1.0, %v1233_v11  ;;  %v1286_v57 = vmul.f32 %v1284_v50, %v1230_v8  ;;  %v1287_v59 = vmul.f32 %v1285_v33, %v1231_v9 }
 0x57f   : > { %2115 = vrcp.f32 %v1234_v12  ;;  %v1247_v19 = vand.u32 2147483648, %v1234_v12  ;;  %v1245_v26 = vand.u32 2147483647, %v1234_v12  ;;  %v1262_v27 = vand.u32 2147483648, %v1235_v13 }
 0x580   : > { %2117 = vrcp.f32 %v1235_v13  ;;  %v1260_v40 = vand.u32 2147483647, %v1235_v13  ;;  %vm1241_vm10 = vweird.f32 %v1234_v12  ;;  %vm1256_vm15 = vweird.f32 %v1235_v13 }
 0x581   : > { %v1248_v42 = vor.u32 1.1754944e-38, %v1247_v19  ;;  %vm1246_vm0 = vcmp.eq.f32.partialorder %v1245_v26, 8.507059e+37  ;;  %v1263_v45 = vor.u32 1.1754944e-38, %v1262_v27  ;;  %v1288_v1 = vmul.f32 1.442695, %v1286_v57 }
 0x582   : > { %vm1261_vm12 = vcmp.eq.f32.partialorder %v1260_v40, 8.507059e+37  ;;  %v1290_v3 = vmul.f32 1.442695, %v1287_v59 }
 0x583   : > { %2119 = vpow2.f32 %v1288_v1 }
 0x584   : > { %2121 = vpow2.f32 %v1290_v3 }
 0x585   : > { %v2116_v22 = vpop.eup %2115 }
 0x586   : > { %v2118_v16 = vpop.eup %2117  ;;  %v1237_v25 = vmul.f32 %v2116_v22, %v1234_v12  ;;  %vm1242_vm13 = vweird.f32 %v2116_v22 }
 0x587   : > { %v1252_v17 = vmul.f32 %v2118_v16, %v1235_v13  ;;  %vm1257_vm1 = vweird.f32 %v2118_v16  ;;  %vm1243_vm14 = vmor %vm1241_vm10, %vm1242_vm13  ;;  %vm1296_vm13 = vcmp.ge.f32.partialorder %v2842_v37, 0.0  ;;  %vm3166_vm10 = vcmask 588800  }
 0x588   : > { %v1238_v18 = vsub.f32 1.0, %v1237_v25  ;;  %vm1258_vm11 = vmor %vm1256_vm15, %vm1257_vm1  ;;  %vm1297_vm1 = vcmp.ge.f32.partialorder %v2845_v7, 0.0  ;;  %vm3168_vm15 = vcmask 1043456  }
 0x589   : > { %v1253_v20 = vsub.f32 1.0, %v1252_v17  ;;  %v2120_v25 = vpop.eup %2119 }
 0x58a   : > { %v1239_v21 = vmul.f32 %v2116_v22, %v1238_v18  ;;  %v2122_v17 = vpop.eup %2121 }
 0x58b   : > { %v1254_v28 = vmul.f32 %v2118_v16, %v1253_v20 }
 0x58c   : > { %v1240_v41 = vadd.f32 %v2116_v22, %v1239_v21 }
 0x58d   : > { %v1255_v43 = vadd.f32 %v2118_v16, %v1254_v28  ;;  %v1226_v28 = vmul.f32 0.5, %v2836_v31 }
 0x58e   : > { %v1244_v44 = vsel %vm1243_vm14, %v2116_v22, %v1240_v41  ;;  %vm3167_vm14 = vmmov %vm3166_vm10 }
 0x58f   : > { %v1249_v48 = vsel %vm1246_vm0, %v1248_v42, %v1244_v44  ;;  %v1259_v49 = vsel %vm1258_vm11, %v2118_v16, %v1255_v43  ;;  %v1227_v42 = vmul.f32 0.5, %v2839_v36  ;;  %vm3169_vm0 = vmmov %vm3168_vm15 }
 0x590   : > { %v1264_v32 = vsel %vm1261_vm12, %v1263_v45, %v1259_v49  ;;  %v1266_v51 = vmul.f32 1.0614054, %v1249_v48  ;;  %vm3170_vm11 = vmmov %vm3169_vm0 }
 0x591   : > { %v1267_v52 = vmul.f32 1.0614054, %v1264_v32  ;;  %vm3171_vm12 = vmmov %vm3169_vm0 }
 0x592   : > { %v1268_v53 = vadd.f32 -1.4531521, %v1266_v51 }
 0x593   : > { %v1269_v54 = vadd.f32 -1.4531521, %v1267_v52 }
 0x594   : > { %v1270_v58 = vmul.f32 %v1268_v53, %v1249_v48 }
 0x595   : > { %v1271_v60 = vmul.f32 %v1269_v54, %v1264_v32 }
 0x596   : > { %v1272_v61 = vadd.f32 1.4214138, %v1270_v58 }
 0x597   : > { %v1273_v62 = vadd.f32 1.4214138, %v1271_v60 }
 0x598   : > { %v1274_v2 = vmul.f32 %v1272_v61, %v1249_v48 }
 0x599   : > { %v1275_v6 = vmul.f32 %v1273_v62, %v1264_v32 }
 0x59a   : > { %v1276_v29 = vadd.f32 -0.28449672, %v1274_v2 }
 0x59b   : > { %v1277_v10 = vadd.f32 -0.28449672, %v1275_v6 }
 0x59c   : > { %v1278_v11 = vmul.f32 %v1276_v29, %v1249_v48 }
 0x59d   : > { %v1279_v12 = vmul.f32 %v1277_v10, %v1264_v32 }
 0x59e   : > { %v1280_v13 = vadd.f32 0.2548296, %v1278_v11 }
 0x59f   : > { %v1281_v22 = vadd.f32 0.2548296, %v1279_v12 }
 0x5a0   : > { %v1282_v16 = vmul.f32 %v1280_v13, %v1249_v48 }
 0x5a1   : > { %v1283_v8 = vmul.f32 %v1281_v22, %v1264_v32 }
 0x5a2   : > { %v1292_v9 = vmul.f32 %v2120_v25, %v1282_v16 }
 0x5a3   : > { %v1293_v18 = vmul.f32 %v2122_v17, %v1283_v8 }
 0x5a4   : > { %v1294_v19 = vsub.f32 1.0, %v1292_v9 }
 0x5a5   : > { %v1295_v20 = vsub.f32 1.0, %v1293_v18 }
 0x5a6   : > { %v1298_v21 = vsub.f32 0.0, %v1294_v19 }
 0x5a7   : > { %v1299_v26 = vsub.f32 0.0, %v1295_v20 }
 0x5a8   : > { %v1300_v27 = vsel %vm1296_vm13, %v1294_v19, %v1298_v21 }
 0x5a9   : > { %v1301_v40 = vsel %vm1297_vm1, %v1295_v20, %v1299_v26  ;;  %v1302_v41 = vadd.f32 1.0, %v1300_v27 }
 0x5aa   : > { %v1303_v43 = vadd.f32 1.0, %v1301_v40 }
 0x5ab   : > { %v1304_v44 = vmul.f32 %v1302_v41, %v1226_v28 }
 0x5ac   : > { %v1305_v45 = vmul.f32 %v1303_v43, %v1227_v42 }
 0x5ad   : > { %1347 = vrot.lane.b32.xlu1 %v1304_v44, %s3131_s3  ;;  %1363 = vrot.lane.b32.xlu0 %v1304_v44, %s2342_s8 }
 0x5ae   : > { %1357 = vrot.lane.b32.xlu2 %v1305_v45, %s2341_s19 }
 0x5b5   : > { %1333 = vrot.lane.b32.xlu1 %v1305_v45, %s3133_s27  ;;  %1365 = vrot.lane.b32.xlu0 %v1305_v45, %s2342_s8 }
 0x5b6   : > { %1331 = vrot.lane.b32.xlu2 %v1304_v44, %s3133_s27 }
 0x5bd   : > { %1315 = vrot.lane.b32.xlu1 %v1304_v44, %s3160_s18  ;;  %1355 = vrot.lane.b32.xlu0 %v1304_v44, %s2341_s19 }
 0x5be   : > { %1325 = vrot.lane.b32.xlu2 %v1305_v45, %s3164_s22 }
 0x5c5   : > { %1309 = vrot.lane.b32.xlu1 %v1305_v45, %s3161_s28  ;;  %1349 = vrot.lane.b32.xlu0 %v1305_v45, %s3131_s3 }
 0x5c6   : > { %1307 = vrot.lane.b32.xlu2 %v1304_v44, %s3161_s28 }
 0x5cd   : > { %1339 = vrot.lane.b32.xlu0 %v1304_v44, %s3165_s5 }
 0x5d5   : > { %1341 = vrot.lane.b32.xlu0 %v1305_v45, %s3165_s5 }
 0x5dd   : > { %1323 = vrot.lane.b32.xlu0 %v1304_v44, %s3164_s22 }
 0x5e5   : > { %1317 = vrot.lane.b32.xlu0 %v1305_v45, %s3160_s18 }
 0x608   : > { %v1358_v50 = vpop.permute.xlu2 %1357 }
 0x610   : > { %v1332_v2 = vpop.permute.xlu2 %1331 }
 0x618   : > { %v1326_v16 = vpop.permute.xlu2 %1325 }
 0x61f   : > { %v1364_v31 = vpop.permute.xlu0 %1363  ;;  %v1348_v54 = vpop.permute.xlu1 %1347 }
 0x620   : > { %v1308_v26 = vpop.permute.xlu2 %1307 }
 0x627   : > { %v1366_v36 = vpop.permute.xlu0 %1365  ;;  %v1334_v1 = vpop.permute.xlu1 %1333 }
 0x628   : > { %v1367_v37 = vsel %vm863_vm3, %v1364_v31, %v1366_v36  ;;  %v1368_v7 = vsel %vm863_vm3, %v1366_v36, %v1364_v31  ;;  %v1335_v12 = vsel %vm819_vm7, %v1332_v2, %v1334_v1  ;;  %v1336_v13 = vsel %vm819_vm7, %v1334_v1, %v1332_v2  ;;  %v1306_v36 = vld [vmem:[%s3103_s11] sm:$0xf] }
 0x629   : > { %v1369_v48 = vmul.f32 %v1367_v37, %v2636_v34  ;;  %v1370_v49 = vmul.f32 %v1368_v7, %v2639_v35  ;;  %v1337_v25 = vmul.f32 %v1336_v13, %v2690_v63  ;;  %v1338_v8 = vmul.f32 %v1335_v12, %v2693_v0 }
 0x62b   : > { %1381 = vmatpush.msrb.mxu2 %v1369_v48  ;;  %1401 = vmatpush.msrb.mxu3 %v1370_v49 }
 0x62f   : > { %v1356_v32 = vpop.permute.xlu0 %1355  ;;  %v1316_v22 = vpop.permute.xlu1 %1315 }
 0x630   : > { %v1359_v51 = vsel %vm852_vm2, %v1356_v32, %v1358_v50  ;;  %v1360_v33 = vsel %vm852_vm2, %v1358_v50, %v1356_v32 }
 0x631   : > { %v1361_v52 = vmul.f32 %v1359_v51, %v2643_v38  ;;  %v1362_v53 = vmul.f32 %v1360_v33, %v2646_v39 }
 0x633   : > { %1382 = vmatpush.msrb.mxu2 %v1361_v52  ;;  %1402 = vmatpush.msrb.mxu3 %v1362_v53 }
 0x637   : > { %v1350_v57 = vpop.permute.xlu0 %1349  ;;  %v1310_v21 = vpop.permute.xlu1 %1309 }
 0x638   : > { %v1351_v58 = vsel %vm841_vm4, %v1348_v54, %v1350_v57  ;;  %v1352_v59 = vsel %vm841_vm4, %v1350_v57, %v1348_v54  ;;  %v1311_v28 = vsel %vm786_vm9, %v1308_v26, %v1310_v21  ;;  %v1312_v40 = vsel %vm786_vm9, %v1310_v21, %v1308_v26  ;;  %v1414_v54 = vld [vmem:[%s3104_s12] sm:$0xf] }
 0x639   : > { %v1353_v60 = vmul.f32 %v1351_v58, %v2659_v46  ;;  %v1354_v61 = vmul.f32 %v1352_v59, %v2662_v47  ;;  %v1314_v31 = vmul.f32 %v1311_v28, %v2731_v24  ;;  %1467 = vperm.xlu1 %2101, %v1414_v54   ;;  %v1415_v57 = vld [vmem:[%s3105_s13] sm:$0xf] }
 0x63b   : > { %1383 = vmatpush.msrb.mxu2 %v1353_v60  ;;  %1403 = vmatpush.msrb.mxu3 %v1354_v61 }
 0x63f   : > { %v1340_v62 = vpop.permute.xlu0 %1339 }
 0x641   : > { %1474 = vperm.xlu1 %2101, %v1415_v57  }
 0x647   : > { %v1342_v3 = vpop.permute.xlu0 %1341 }
 0x648   : > { %v1343_v6 = vsel %vm830_vm5, %v1340_v62, %v1342_v3  ;;  %v1344_v29 = vsel %vm830_vm5, %v1342_v3, %v1340_v62 }
 0x649   : > { %v1345_v10 = vmul.f32 %v1343_v6, %v2674_v55  ;;  %v1346_v11 = vmul.f32 %v1344_v29, %v2677_v56 }
 0x64b   : > { %1384 = vmatpush.msrb.mxu2 %v1345_v10  ;;  %1404 = vmatpush.msrb.mxu3 %v1346_v11 }
 0x64d   : > { %1385 = vmatpush.msrb.mxu2 %v1304_v44  ;;  %1405 = vmatpush.msrb.mxu3 %v1305_v45  ;;  %v1313_v45 = vmul.f32 %v1312_v40, %v2728_v23 }
 0x64f   : > { %1386 = vmatpush.msrb.mxu2 %v1337_v25  ;;  %1406 = vmatpush.msrb.mxu3 %v1338_v8  ;;  %v1324_v17 = vpop.permute.xlu0 %1323 }
 0x650   : > { %v1327_v9 = vsel %vm808_vm6, %v1324_v17, %v1326_v16  ;;  %v1328_v18 = vsel %vm808_vm6, %v1326_v16, %v1324_v17 }
 0x651   : > { %v1329_v19 = vmul.f32 %v1328_v18, %v2696_v4  ;;  %v1330_v20 = vmul.f32 %v1327_v9, %v2699_v5 }
 0x653   : > { %1387 = vmatpush.msrb.mxu2 %v1329_v19  ;;  %1407 = vmatpush.msrb.mxu3 %v1330_v20 }
 0x657   : > { %v1318_v27 = vpop.permute.xlu0 %1317 }
 0x658   : > { %v1319_v41 = vsel %vm797_vm8, %v1316_v22, %v1318_v27  ;;  %v1320_v42 = vsel %vm797_vm8, %v1318_v27, %v1316_v22 }
 0x659   : > { %v1321_v43 = vmul.f32 %v1320_v42, %v2715_v14  ;;  %v1322_v44 = vmul.f32 %v1319_v41, %v2718_v15 }
 0x65b   : > { %1388 = vmatpush.msrb.mxu2 %v1321_v43  ;;  %1408 = vmatpush.msrb.mxu3 %v1322_v44 }
 0x65d   : > { %1389 = vmatpush.msrb.mxu2 %v1313_v45  ;;  %1409 = vmatpush.msrb.mxu3 %v1314_v31 }
 0x65e   : > { %1975 = vmatmul.msk.f32.vlgmr.msrb.gmra.mxu2 %vm3166_vm10, %v1306_v36  ;;  %1976 = vmatmul.msk.f32.vlgmr.msrb.gmra.mxu3 %vm3167_vm14, %v1306_v36 }
 0x6ab   : > { %v1468_v20 = vpop.permute.xlu1 %1467 }
 0x6b3   : > { %v1475_v44 = vpop.permute.xlu1 %1474 }
 0x6e1   : > { %v1391_v37 = vpop.f32.mrf.mxu2  ;;  %v1411_v7 = vpop.f32.mrf.mxu3 }
 0x6e2   : > { %v1416_v48 = vsel %vm3168_vm15, %v1391_v37, 0.0  ;;  %v1429_v49 = vmul.f32 %v1391_v37, %v1391_v37  ;;  %v1417_v50 = vsel %vm3169_vm0, %v1411_v7, 0.0  ;;  %v1430_v32 = vmul.f32 %v1411_v7, %v1411_v7 }
 0x6e3   : > { %v1418_v51 = vadd.f32 %v1417_v50, %v1416_v48 }
 0x6e4   : > { %v1431_v33 = vsel %vm3170_vm11, %v1429_v49, 0.0  ;;  %v1432_v52 = vsel %vm3171_vm12, %v1430_v32, 0.0 }
 0x6e5   : > { %1419 = vadd.xlane.f32.xlu0 %v1418_v51  ;;  %v1433_v53 = vadd.f32 %v1432_v52, %v1431_v33 }
 0x6e7   : > { %1434 = vadd.xlane.f32.xlu2 %v1433_v53 }
 0x758   : > { %v1420_v58 = vpop.xlane.xlu0 %1419 }
 0x759   : > { %v1421_v59 = vrot.slane %v1420_v58, 4 }
 0x75a   : > { %v1435_v60 = vpop.xlane.xlu2 %1434 }
 0x75b   : > { %v1422_v61 = vadd.f32 %v1421_v59, %v1420_v58  ;;  %v1436_v62 = vrot.slane %v1435_v60, 4 }
 0x75d   : > { %v1423_v1 = vrot.slane %v1422_v61, 2  ;;  %v1437_v2 = vadd.f32 %v1436_v62, %v1435_v60 }
 0x75f   : > { %v1438_v3 = vrot.slane %v1437_v2, 2  ;;  %v1424_v6 = vadd.f32 %v1423_v1, %v1422_v61 }
 0x761   : > { %v1425_v29 = vrot.slane %v1424_v6, 1  ;;  %v1439_v10 = vadd.f32 %v1438_v3, %v1437_v2 }
 0x763   : > { %v1426_v11 = vadd.f32 %v1425_v29, %v1424_v6  ;;  %v1440_v12 = vrot.slane %v1439_v10, 1 }
 0x765   : > { %2000 = vpush %v1426_v11  ;;  %v1441_v13 = vadd.f32 %v1440_v12, %v1439_v10 }
 0x767   : > { %2002 = vpush %v1441_v13 }
 0x796   : > { %s2001_s20 = spop %2000 }
 0x797   : > { %s1428_s25 = smul.f32 0.0009765625, %s2001_s20 }
 0x798   : > { %s2003_s23 = spop %2002 }
 0x799   : > { %s1444_s26 = smul.f32 %s1428_s25, %s1428_s25  ;;  %v1446_v21 = vstv %s1428_s25 }
 0x79a   : > { %s1443_s29 = smul.f32 0.0009765625, %s2003_s23  ;;  %v1447_v26 = vsub.f32 %v1391_v37, %v1446_v21  ;;  %v1448_v27 = vsub.f32 %v1411_v7, %v1446_v21 }
 0x79c   : > { %s1445_s3 = ssub.f32 %s1443_s29, %s1444_s26  ;;  %s1966_s26 = sshll.u32 %s2556_s1, 3 }
 0x79d   : > { %s1987_s29 = sshll.u32 %s2473_s24, 3  ;;  %s1817_s24 = scalar_lea.sflag [#allocation4], %s2556_s1 }
 0x79e   : > { %s1449_s27 = sadd.f32 1e-05, %s1445_s3  ;;  %s3172_s3 = smov 1  }
 0x7a0   : > { %v1450_v22 = vstv %s1449_s27  ;;  %s3173_s27 = smov 113  }
 0x7a1   : > { %2123 = vrsqrt.f32 %v1450_v22  ;;  %vm1457_vm1 = vweird.f32 %v1450_v22 }
 0x7a7   : > { %v2124_v16 = vpop.eup %2123 }
 0x7a8   : > { %v1452_v25 = vmul.f32 %v2124_v16, %v1450_v22  ;;  %vm1458_vm13 = vweird.f32 %v2124_v16 }
 0x7a9   : > { %vm1459_vm10 = vmor %vm1457_vm1, %vm1458_vm13 }
 0x7aa   : > { %v1453_v8 = vmul.f32 %v2124_v16, %v1452_v25 }
 0x7ac   : > { %v1454_v17 = vmul.f32 0.5, %v1453_v8 }
 0x7ae   : > { %v1455_v9 = vsub.f32 1.5, %v1454_v17 }
 0x7b0   : > { %v1456_v18 = vmul.f32 %v2124_v16, %v1455_v9 }
 0x7b2   : > { %v1460_v19 = vsel %vm1459_vm10, %v2124_v16, %v1456_v18 }
 0x7b3   : > { %2004 = vpush %v1460_v19 }
 0x7e4   : > { %s2005_s20 = spop %2004 }
 0x7e5   : > { %v1462_v28 = vstv %s2005_s20 }
 0x7e6   : > { %v1463_v40 = vmul.f32 %v1462_v28, %v1447_v26  ;;  %v1464_v41 = vmul.f32 %v1462_v28, %v1448_v27 }
 0x7e8   : > { %v1470_v42 = vmul.f32 %v1468_v20, %v1463_v40  ;;  %v1471_v43 = vmul.f32 %v1468_v20, %v1464_v41 }
 0x7ea   : > { %v2932_v45 = vadd.f32 %v1475_v44, %v1470_v42  ;;  %v2934_v31 = vadd.f32 %v1475_v44, %v1471_v43 }
 0x7ec   : > { %v2937_v36 = vmul.f32 0.70710677, %v2932_v45  ;;  %v2940_v48 = vmul.f32 0.70710677, %v2934_v31 }
 0x7ee   : > { %v1483_v37 = vand.u32 2147483647, %v2937_v36  ;;  %v1484_v7 = vand.u32 2147483647, %v2940_v48 }
 0x7f0   : > { %v1485_v49 = vmul.f32 0.3275911, %v1483_v37  ;;  %v1486_v50 = vmul.f32 0.3275911, %v1484_v7  ;;  %v1537_v22 = vsub.f32 0.0, %v1483_v37  ;;  %v1538_v8 = vsub.f32 0.0, %v1484_v7 }
 0x7f2   : > { %v1487_v32 = vadd.f32 1.0, %v1485_v49  ;;  %v1488_v51 = vadd.f32 1.0, %v1486_v50  ;;  %v1539_v19 = vmul.f32 %v1537_v22, %v1483_v37  ;;  %v1540_v21 = vmul.f32 %v1538_v8, %v1484_v7 }
 0x7f4   : > { %2125 = vrcp.f32 %v1487_v32  ;;  %v1500_v58 = vand.u32 2147483648, %v1487_v32  ;;  %v1498_v61 = vand.u32 2147483647, %v1487_v32  ;;  %v1515_v62 = vand.u32 2147483648, %v1488_v51 }
 0x7f5   : > { %2127 = vrcp.f32 %v1488_v51  ;;  %v1513_v2 = vand.u32 2147483647, %v1488_v51  ;;  %vm1494_vm0 = vweird.f32 %v1487_v32  ;;  %vm1509_vm12 = vweird.f32 %v1488_v51 }
 0x7f6   : > { %v1501_v6 = vor.u32 1.1754944e-38, %v1500_v58  ;;  %vm1499_vm13 = vcmp.eq.f32.partialorder %v1498_v61, 8.507059e+37  ;;  %v1516_v11 = vor.u32 1.1754944e-38, %v1515_v62  ;;  %v1541_v40 = vmul.f32 1.442695, %v1539_v19 }
 0x7f7   : > { %vm1514_vm10 = vcmp.eq.f32.partialorder %v1513_v2, 8.507059e+37  ;;  %v1543_v42 = vmul.f32 1.442695, %v1540_v21 }
 0x7f8   : > { %2129 = vpow2.f32 %v1541_v40 }
 0x7f9   : > { %2131 = vpow2.f32 %v1543_v42 }
 0x7fa   : > { %v2126_v33 = vpop.eup %2125 }
 0x7fb   : > { %v2128_v52 = vpop.eup %2127  ;;  %v1490_v53 = vmul.f32 %v2126_v33, %v1487_v32  ;;  %vm1495_vm14 = vweird.f32 %v2126_v33 }
 0x7fc   : > { %v1505_v54 = vmul.f32 %v2128_v52, %v1488_v51  ;;  %vm1510_vm15 = vweird.f32 %v2128_v52  ;;  %vm1496_vm11 = vmor %vm1494_vm0, %vm1495_vm14  ;;  %vm1549_vm14 = vcmp.ge.f32.partialorder %v2937_v36, 0.0  ;;  %vm3174_vm0 = vcmask 1043456  }
 0x7fd   : > { %v1491_v57 = vsub.f32 1.0, %v1490_v53  ;;  %vm1511_vm1 = vmor %vm1509_vm12, %vm1510_vm15  ;;  %vm1550_vm15 = vcmp.ge.f32.partialorder %v2940_v48, 0.0 }
 0x7fe   : > { %v1506_v59 = vsub.f32 1.0, %v1505_v54  ;;  %v2130_v53 = vpop.eup %2129  ;;  %vm3179_vm12 = vmmov %vm3174_vm0 }
 0x7ff   : > { %v1492_v60 = vmul.f32 %v2126_v33, %v1491_v57  ;;  %v2132_v54 = vpop.eup %2131 }
 0x800   : > { %v1507_v1 = vmul.f32 %v2128_v52, %v1506_v59 }
 0x801   : > { %v1493_v3 = vadd.f32 %v2126_v33, %v1492_v60 }
 0x802   : > { %v1508_v29 = vadd.f32 %v2128_v52, %v1507_v1  ;;  %v1479_v1 = vmul.f32 0.5, %v2932_v45 }
 0x803   : > { %v1497_v10 = vsel %vm1496_vm11, %v2126_v33, %v1493_v3  ;;  %vm3175_vm11 = vmmov %vm3174_vm0 }
 0x804   : > { %v1502_v12 = vsel %vm1499_vm13, %v1501_v6, %v1497_v10  ;;  %v1512_v13 = vsel %vm1511_vm1, %v2128_v52, %v1508_v29  ;;  %v1480_v6 = vmul.f32 0.5, %v2934_v31  ;;  %vm3181_vm13 = vmmov %vm3174_vm0 }
 0x805   : > { %v1517_v16 = vsel %vm1514_vm10, %v1516_v11, %v1512_v13  ;;  %v1519_v25 = vmul.f32 1.0614054, %v1502_v12  ;;  %vm3186_vm1 = vmmov %vm3174_vm0 }
 0x806   : > { %v1520_v17 = vmul.f32 1.0614054, %v1517_v16  ;;  %vm3187_vm10 = vmmov %vm3174_vm0 }
 0x807   : > { %v1521_v9 = vadd.f32 -1.4531521, %v1519_v25 }
 0x808   : > { %v1522_v18 = vadd.f32 -1.4531521, %v1520_v17 }
 0x809   : > { %v1523_v20 = vmul.f32 %v1521_v9, %v1502_v12 }
 0x80a   : > { %v1524_v26 = vmul.f32 %v1522_v18, %v1517_v16 }
 0x80b   : > { %v1525_v27 = vadd.f32 1.4214138, %v1523_v20 }
 0x80c   : > { %v1526_v28 = vadd.f32 1.4214138, %v1524_v26 }
 0x80d   : > { %v1527_v41 = vmul.f32 %v1525_v27, %v1502_v12 }
 0x80e   : > { %v1528_v43 = vmul.f32 %v1526_v28, %v1517_v16 }
 0x80f   : > { %v1529_v44 = vadd.f32 -0.28449672, %v1527_v41 }
 0x810   : > { %v1530_v49 = vadd.f32 -0.28449672, %v1528_v43 }
 0x811   : > { %v1531_v50 = vmul.f32 %v1529_v44, %v1502_v12 }
 0x812   : > { %v1532_v32 = vmul.f32 %v1530_v49, %v1517_v16 }
 0x813   : > { %v1533_v51 = vadd.f32 0.2548296, %v1531_v50 }
 0x814   : > { %v1534_v33 = vadd.f32 0.2548296, %v1532_v32 }
 0x815   : > { %v1535_v52 = vmul.f32 %v1533_v51, %v1502_v12 }
 0x816   : > { %v1536_v37 = vmul.f32 %v1534_v33, %v1517_v16 }
 0x817   : > { %v1545_v7 = vmul.f32 %v2130_v53, %v1535_v52 }
 0x818   : > { %v1546_v57 = vmul.f32 %v2132_v54, %v1536_v37 }
 0x819   : > { %v1547_v58 = vsub.f32 1.0, %v1545_v7 }
 0x81a   : > { %v1548_v59 = vsub.f32 1.0, %v1546_v57 }
 0x81b   : > { %v1551_v60 = vsub.f32 0.0, %v1547_v58 }
 0x81c   : > { %v1552_v61 = vsub.f32 0.0, %v1548_v59 }
 0x81d   : > { %v1553_v62 = vsel %vm1549_vm14, %v1547_v58, %v1551_v60  ;;  %vm3188_vm14 = vmmov %vm3174_vm0 }
 0x81e   : > { %v1554_v2 = vsel %vm1550_vm15, %v1548_v59, %v1552_v61  ;;  %v1555_v3 = vadd.f32 1.0, %v1553_v62 }
 0x81f   : > { %v1556_v29 = vadd.f32 1.0, %v1554_v2 }
 0x820   : > { %v1557_v10 = vmul.f32 %v1555_v3, %v1479_v1 }
 0x821   : > { %v1558_v11 = vmul.f32 %v1556_v29, %v1480_v6 }
 0x822   : > { %1592 = vrot.lane.b32.xlu2 %v1557_v10, %s3165_s5  ;;  %1608 = vrot.lane.b32.xlu1 %v1557_v10, %s2341_s19 }
 0x823   : > { %1618 = vrot.lane.b32.xlu0 %v1558_v11, %s2342_s8 }
 0x82a   : > { %1586 = vrot.lane.b32.xlu2 %v1558_v11, %s3172_s3  ;;  %1610 = vrot.lane.b32.xlu1 %v1558_v11, %s2341_s19  ;;  %s3189_s19 = sld [smem:[#allocation27_spill]] }
 0x82b   : > { %1602 = vrot.lane.b32.xlu0 %v1558_v11, %s3173_s27 }
 0x832   : > { %1576 = vrot.lane.b32.xlu2 %v1557_v10, %s3164_s22  ;;  %1616 = vrot.lane.b32.xlu1 %v1557_v10, %s2342_s8 }
 0x833   : > { %1568 = vrot.lane.b32.xlu0 %v1557_v10, %s3160_s18 }
 0x83a   : > { %1562 = vrot.lane.b32.xlu2 %v1558_v11, %s3161_s28  ;;  %1594 = vrot.lane.b32.xlu1 %v1558_v11, %s3165_s5 }
 0x83b   : > { %1578 = vrot.lane.b32.xlu0 %v1558_v11, %s3164_s22  ;;  %s3184_s22 = sld [smem:[#allocation23_spill]] }
 0x841   : > { %s699_s5 = scalar_lea.vmem %s3184_s22, %s2577_s0 }
 0x842   : > { %1600 = vrot.lane.b32.xlu1 %v1557_v10, %s3173_s27  ;;  %v1771_v30 = vld [vmem:[%s699_s5] sm:$0x1]  ;;  %s3190_s27 = sld [smem:[#allocation28_spill]] }
 0x84a   : > { %1584 = vrot.lane.b32.xlu1 %v1557_v10, %s3172_s3 }
 0x852   : > { %1570 = vrot.lane.b32.xlu1 %v1558_v11, %s3160_s18 }
 0x85a   : > { %1560 = vrot.lane.b32.xlu1 %v1557_v10, %s3161_s28 }
 0x87c   : > { %v1593_v8 = vpop.permute.xlu2 %1592 }
 0x884   : > { %v1587_v26 = vpop.permute.xlu2 %1586 }
 0x88c   : > { %v1577_v52 = vpop.permute.xlu2 %1576 }
 0x894   : > { %v1609_v45 = vpop.permute.xlu1 %1608 }
 0x895   : > { %v1619_v31 = vpop.permute.xlu0 %1618 }
 0x89c   : > { %v1611_v36 = vpop.permute.xlu1 %1610 }
 0x89d   : > { %v1603_v22 = vpop.permute.xlu0 %1602  ;;  %v1612_v9 = vsel %vm852_vm2, %v1609_v45, %v1611_v36  ;;  %v1613_v18 = vsel %vm852_vm2, %v1611_v36, %v1609_v45  ;;  %vm3176_vm2 = vmmov %vm3174_vm0 }
 0x89e   : > { %v1615_v21 = vmul.f32 %v1613_v18, %v2646_v39 }
 0x8a0   : > { %v1645_v42 = vrot.slane %v1615_v21, 4 }
 0x8a4   : > { %v1617_v48 = vpop.permute.xlu1 %1616 }
 0x8a5   : > { %v1620_v12 = vsel %vm863_vm3, %v1617_v48, %v1619_v31  ;;  %v1621_v13 = vsel %vm863_vm3, %v1619_v31, %v1617_v48  ;;  %v1569_v20 = vpop.permute.xlu0 %1568  ;;  %vm3177_vm3 = vmmov %vm3174_vm0 }
 0x8a6   : > { %v1622_v16 = vmul.f32 %v1620_v12, %v2636_v34  ;;  %v1623_v25 = vmul.f32 %v1621_v13, %v2639_v35  ;;  %v1614_v35 = vmul.f32 %v1612_v9, %v2643_v38 }
 0x8a8   : > { %1977 = vmatpush.msk.msra.mxu0 %vm3174_vm0, %v1622_v16  ;;  %1979 = vmatpush.msk.msra.mxu1 %vm3175_vm11, %v1623_v25  ;;  %v1644_v41 = vrot.slane %v1614_v35, 4 }
 0x8ac   : > { %v1595_v17 = vpop.permute.xlu1 %1594 }
 0x8ad   : > { %v1596_v19 = vsel %vm830_vm5, %v1593_v8, %v1595_v17  ;;  %v1597_v34 = vsel %vm830_vm5, %v1595_v17, %v1593_v8  ;;  %vm3178_vm5 = vmmov %vm3174_vm0 }
 0x8ae   : > { %v1598_v27 = vmul.f32 %v1596_v19, %v2674_v55  ;;  %v1599_v28 = vmul.f32 %v1597_v34, %v2677_v56  ;;  %v1579_v56 = vpop.permute.xlu0 %1578 }
 0x8b0   : > { %v1638_v49 = vrot.slane %v1598_v27, 4  ;;  %v1639_v50 = vrot.slane %v1599_v28, 4 }
 0x8b2   : > { %v1652_v51 = vsel %vm3178_vm5, %v1557_v10, %v1638_v49  ;;  %v1653_v33 = vsel %vm3179_vm12, %v1558_v11, %v1639_v50  ;;  %v1706_v49 = vld [vmem:[%s3107_s15] sm:$0xf] }
 0x8b4   : > { %v1601_v40 = vpop.permute.xlu1 %1600 }
 0x8b5   : > { %v1604_v43 = vsel %vm841_vm4, %v1601_v40, %v1603_v22  ;;  %v1605_v44 = vsel %vm841_vm4, %v1603_v22, %v1601_v40  ;;  %vm3180_vm4 = vmmov %vm3174_vm0 }
 0x8b6   : > { %v1606_v38 = vmul.f32 %v1604_v43, %v2659_v46  ;;  %v1607_v39 = vmul.f32 %v1605_v44, %v2662_v47  ;;  %v1580_v46 = vsel %vm808_vm6, %v1577_v52, %v1579_v56  ;;  %v1581_v47 = vsel %vm808_vm6, %v1579_v56, %v1577_v52  ;;  %v1707_v56 = vld [vmem:[%s3108_s16] sm:$0xf] }
 0x8b7   : > { %v1582_v58 = vmul.f32 %v1581_v47, %v2696_v4  ;;  %v1583_v59 = vmul.f32 %v1580_v46, %v2699_v5  ;;  %v1563_v5 = vpop.permute.xlu2 %1562  ;;  %vm1656_vm6 = vcmask 293888  }
 0x8b8   : > { %v1654_v32 = vsel %vm3176_vm2, %v1606_v38, %v1644_v41  ;;  %v1655_v55 = vsel %vm3177_vm3, %v1607_v39, %v1645_v42  ;;  %v1792_v38 = vld [vmem:[%s3109_s17] sm:$0xf]  ;;  %vm1797_vm3 = vcmask 257024  }
 0x8b9   : > { %1678 = vmatpush.msra.mxu0 %v1654_v32  ;;  %1698 = vmatpush.msra.mxu1 %v1655_v55 }
 0x8bb   : > { %1679 = vmatpush.msra.mxu0 %v1652_v51  ;;  %1699 = vmatpush.msra.mxu1 %v1653_v33 }
 0x8bc   : > { %v1585_v53 = vpop.permute.xlu1 %1584 }
 0x8bd   : > { %v1588_v37 = vsel %vm819_vm7, %v1585_v53, %v1587_v26  ;;  %v1589_v54 = vsel %vm819_vm7, %v1587_v26, %v1585_v53  ;;  %vm3182_vm7 = vmmov %vm3174_vm0 }
 0x8be   : > { %v1590_v7 = vmul.f32 %v1589_v54, %v2690_v63  ;;  %v1591_v57 = vmul.f32 %v1588_v37, %v2693_v0 }
 0x8c0   : > { %v1632_v60 = vrot.slane %v1590_v7, 4  ;;  %v1633_v61 = vrot.slane %v1591_v57, 4 }
 0x8c2   : > { %v1650_v62 = vsel %vm3180_vm4, %v1582_v58, %v1632_v60  ;;  %v1651_v1 = vsel %vm3181_vm13, %v1583_v59, %v1633_v61  ;;  %vm3192_vm13 = vmmov %vm3186_vm1 }
 0x8c3   : > { %1680 = vmatpush.msra.mxu0 %v1650_v62  ;;  %1700 = vmatpush.msra.mxu1 %v1651_v1  ;;  %v1801_v62 = vld [vmem:[%s3189_s19] sm:$0xf]  ;;  %s1828_s19 = scalar_lea.hbm %s3190_s27, %s1987_s29 }
 0x8c4   : > { %v1571_v2 = vpop.permute.xlu1 %1570 }
 0x8c5   : > { %v1572_v3 = vsel %vm797_vm8, %v1569_v20, %v1571_v2  ;;  %v1573_v63 = vsel %vm797_vm8, %v1571_v2, %v1569_v20  ;;  %vm3183_vm8 = vmmov %vm3174_vm0 }
 0x8c6   : > { %v1574_v0 = vmul.f32 %v1573_v63, %v2715_v14  ;;  %v1575_v4 = vmul.f32 %v1572_v3, %v2718_v15  ;;  %v1559_v14 = vld [vmem:[%s3106_s14] sm:$0xf] }
 0x8c8   : > { %v1626_v11 = vrot.slane %v1574_v0, 4  ;;  %v1627_v45 = vrot.slane %v1575_v4, 4 }
 0x8cc   : > { %v1561_v6 = vpop.permute.xlu1 %1560 }
 0x8cd   : > { %v1564_v29 = vsel %vm786_vm9, %v1561_v6, %v1563_v5  ;;  %v1565_v10 = vsel %vm786_vm9, %v1563_v5, %v1561_v6  ;;  %vm3185_vm9 = vmmov %vm3174_vm0 }
 0x8ce   : > { %v1566_v31 = vmul.f32 %v1565_v10, %v2728_v23  ;;  %v1567_v36 = vmul.f32 %v1564_v29, %v2731_v24  ;;  %v1772_v23 = vsub.f32 0.0, %v1771_v30 }
 0x8d0   : > { %v1648_v15 = vsel %vm3182_vm7, %v1566_v31, %v1626_v11  ;;  %v1649_v48 = vsel %vm3183_vm8, %v1567_v36, %v1627_v45  ;;  %v1773_v24 = vmul.f32 1.442695, %v1772_v23 }
 0x8d1   : > { %1681 = vmatpush.msra.mxu0 %v1648_v15  ;;  %1701 = vmatpush.msra.mxu1 %v1649_v48 }
 0x8d2   : > { %1978 = vmatmul.msk.f32.vlgmr.msra.gmra.mxu0 %vm1656_vm6, %v1559_v14  ;;  %1980 = vmatmul.msk.f32.vlgmr.msra.gmra.mxu1 %vm1656_vm6, %v1559_v14  ;;  %2133 = vpow2.f32 %v1773_v24 }
 0x8d8   : > { %v2134_v22 = vpop.eup %2133 }
 0x8d9   : > { %v1775_v18 = vadd.f32 1.0, %v2134_v22 }
 0x8db   : > { %2135 = vrcp.f32 %v1775_v18  ;;  %v1787_v26 = vand.u32 2147483648, %v1775_v18  ;;  %vm1781_vm15 = vweird.f32 %v1775_v18  ;;  %v1785_v28 = vand.u32 2147483647, %v1775_v18 }
 0x8dd   : > { %v1788_v41 = vor.u32 1.1754944e-38, %v1787_v26  ;;  %vm1786_vm2 = vcmp.eq.f32.partialorder %v1785_v28, 8.507059e+37 }
 0x8e1   : > { %v2136_v35 = vpop.eup %2135 }
 0x8e2   : > { %v1777_v21 = vmul.f32 %v2136_v35, %v1775_v18  ;;  %vm1782_vm0 = vweird.f32 %v2136_v35 }
 0x8e3   : > { %vm1783_vm11 = vmor %vm1781_vm15, %vm1782_vm0 }
 0x8e4   : > { %v1778_v27 = vsub.f32 1.0, %v1777_v21 }
 0x8e6   : > { %v1779_v40 = vmul.f32 %v2136_v35, %v1778_v27 }
 0x8e8   : > { %v1780_v42 = vadd.f32 %v2136_v35, %v1779_v40 }
 0x8ea   : > { %v1784_v43 = vsel %vm1783_vm11, %v2136_v35, %v1780_v42 }
 0x8eb   : > { %v1789_v44 = vsel %vm1786_vm2, %v1788_v41, %v1784_v43 }
 0x8ec   : > { %v1791_v50 = vmul.f32 %v1789_v44, %v1771_v30 }
 0x8ee   : > { %v1794_v39 = vperm.slane %v1791_v50, 0 }
 0x8f0   : > { %v1796_v32 = vmul.f32 %v1794_v39, %v1792_v38 }
 0x8f2   : > { %v1798_v55 = vsel %vm1797_vm3, %v1796_v32, 0.0 }
 0x8f3   : > { %1799 = vadd.xlane.f32.xlu2 %v1798_v55 }
 0x94f   : > { %v3029_v12 = vpop.f32.mrf.mxu0  ;;  %v3031_v13 = vpop.f32.mrf.mxu1 }
 0x950   : > { %v1708_v16 = vsel %vm3185_vm9, %v3029_v12, 0.0  ;;  %v1721_v25 = vmul.f32 %v3029_v12, %v3029_v12  ;;  %v1709_v8 = vsel %vm3186_vm1, %v3031_v13, 0.0  ;;  %v1722_v17 = vmul.f32 %v3031_v13, %v3031_v13 }
 0x951   : > { %v1710_v9 = vadd.f32 %v1709_v8, %v1708_v16 }
 0x952   : > { %v1723_v19 = vsel %vm3187_vm10, %v1721_v25, 0.0  ;;  %v1724_v34 = vsel %vm3188_vm14, %v1722_v17, 0.0 }
 0x953   : > { %1711 = vadd.xlane.f32.xlu0 %v1710_v9  ;;  %v1725_v20 = vadd.f32 %v1724_v34, %v1723_v19 }
 0x955   : > { %1726 = vadd.xlane.f32.xlu1 %v1725_v20 }
 0x966   : > { %v1800_v1 = vpop.xlane.xlu2 %1799 }
 0x967   : > { %1759 = vperm.xlu0 %2100, %v1706_v49   ;;  %v1802_v2 = vadd.f32 %v1801_v62, %v1800_v1 }
 0x969   : > { %1805 = vperm.xlu2 %2102, %v1802_v2  }
 0x96e   : > { %1766 = vperm.xlu1 %2101, %v1707_v56  }
 0x9c3   : > { %v1806_v22 = vpop.permute.xlu2 %1805 }
 0x9c6   : > { %v1712_v51 = vpop.xlane.xlu0 %1711 }
 0x9c7   : > { %v1713_v33 = vrot.slane %v1712_v51, 4 }
 0x9c8   : > { %v1727_v52 = vpop.xlane.xlu1 %1726 }
 0x9c9   : > { %v1714_v53 = vadd.f32 %v1713_v33, %v1712_v51  ;;  %v1728_v46 = vrot.slane %v1727_v52, 4 }
 0x9cb   : > { %v1715_v47 = vrot.slane %v1714_v53, 2  ;;  %v1729_v37 = vadd.f32 %v1728_v46, %v1727_v52 }
 0x9cd   : > { %v1730_v54 = vrot.slane %v1729_v37, 2  ;;  %v1716_v7 = vadd.f32 %v1715_v47, %v1714_v53 }
 0x9cf   : > { %v1717_v57 = vrot.slane %v1716_v7, 1  ;;  %v1731_v58 = vadd.f32 %v1730_v54, %v1729_v37 }
 0x9d1   : > { %v1718_v59 = vadd.f32 %v1717_v57, %v1716_v7  ;;  %v1732_v60 = vrot.slane %v1731_v58, 1 }
 0x9d3   : > { %2006 = vpush %v1718_v59  ;;  %v1733_v61 = vadd.f32 %v1732_v60, %v1731_v58 }
 0x9d5   : > { %2008 = vpush %v1733_v61 }
 0x9d9   : > { %v1760_v48 = vpop.permute.xlu0 %1759 }
 0x9e0   : > { %v1767_v24 = vpop.permute.xlu1 %1766 }
 0xa04   : > { %s2007_s8 = spop %2006 }
 0xa05   : > { %s1720_s18 = smul.f32 0.0009765625, %s2007_s8 }
 0xa06   : > { %s2009_s28 = spop %2008 }
 0xa07   : > { %s1736_s22 = smul.f32 %s1720_s18, %s1720_s18  ;;  %v1738_v11 = vstv %s1720_s18  ;;  %s691_s18 = scalar_lea.vmem [#allocation10], %s1966_s26 }
 0xa08   : > { %s1735_s5 = smul.f32 0.0009765625, %s2009_s28  ;;  %v1739_v45 = vsub.f32 %v3029_v12, %v1738_v11  ;;  %v1740_v31 = vsub.f32 %v3031_v13, %v1738_v11  ;;  %s1830_s28 = sshll.u32 %s691_s18, 4  ;;  %s1831_s28 = int_to_ptr.vmem [resolvable:$true] %s1830_s28 }
 0xa09   : > { %s2279_s26 = scalar_lea.hbm %s3190_s27, 16 }
 0xa0a   : > { %s1737_s0 = ssub.f32 %s1735_s5, %s1736_s22  ;;  %s1832_s22 = sshll.u32 %s1828_s19, 4  ;;  %s1833_s22 = int_to_ptr.hbm [resolvable:$true] %s1832_s22 }
 0xa0b   : > { %s2273_s5 = sshra.s32 %s1833_s22, 4  ;;  %s2274_s5 = int_to_ptr.hbm [resolvable:$true] %s2273_s5 }
 0xa0c   : > { %s1741_s25 = sadd.f32 1e-05, %s1737_s0  ;;  %s2275_s0 = scalar_lea.hbm %s2274_s5, 8 }
 0xa0d   : > { %p2276_p3 = scmp.ne.s32.totalorder %s2274_s5, %s2275_s0  ;;  %p2280_p8 = scmp.lt.s32.totalorder %s2274_s5, %s3190_s27 }
 0xa0e   : > { %v1742_v3 = vstv %s1741_s25  ;;  %p2281_p7 = scmp.lt.s32.totalorder %s2279_s26, %s2275_s0 }
 0xa0f   : > { %2137 = vrsqrt.f32 %v1742_v3  ;;  %vm1749_vm12 = vweird.f32 %v1742_v3  ;;  %p2277_p5 = pnand %p2276_p3, %p2525_p13 }
 0xa10   : > { %p2282_p9 = por %p2281_p7, %p2280_p8 }
 0xa11   : > { %p2278_p12 = pneg %p2277_p5 }
 0xa13   : > { %p2283_p10 = pnand %p2282_p9, %p2278_p12 }
 0xa15   : > { %v2138_v63 = vpop.eup %2137 }
 0xa16   : > { %v1744_v0 = vmul.f32 %v2138_v63, %v1742_v3  ;;  %vm1750_vm5 = vweird.f32 %v2138_v63 }
 0xa17   : > { %vm1751_vm4 = vmor %vm1749_vm12, %vm1750_vm5 }
 0xa18   : > { %v1745_v4 = vmul.f32 %v2138_v63, %v1744_v0 }
 0xa1a   : > { %v1746_v5 = vmul.f32 0.5, %v1745_v4 }
 0xa1c   : > { %v1747_v6 = vsub.f32 1.5, %v1746_v5 }
 0xa1e   : > { %v1748_v29 = vmul.f32 %v2138_v63, %v1747_v6 }
 0xa20   : > { %v1752_v10 = vsel %vm1751_vm4, %v2138_v63, %v1748_v29 }
 0xa21   : > { %2010 = vpush %v1752_v10 }
 0xa52   : > { %s2011_s23 = spop %2010 }
 0xa53   : > { %v1754_v36 = vstv %s2011_s23 }
 0xa54   : > { %v1755_v14 = vmul.f32 %v1754_v36, %v1739_v45  ;;  %v1756_v15 = vmul.f32 %v1754_v36, %v1740_v31 }
 0xa56   : > { %v1762_v30 = vmul.f32 %v1760_v48, %v1755_v14  ;;  %v1763_v23 = vmul.f32 %v1760_v48, %v1756_v15 }
 0xa58   : > { %v1769_v16 = vadd.f32 %v1767_v24, %v1762_v30  ;;  %v1770_v12 = vadd.f32 %v1767_v24, %v1763_v23 }
 0xa5a   : > { %v1809_v13 = vadd.f32 %v1806_v22, %v1770_v12  ;;  %v1808_v25 = vadd.f32 %v1806_v22, %v1769_v16 }
 0xa5c   : > { %v1812_v8 = vrot.slane %v1809_v13, 4 }
 0xa5e   : > { %v1813_v17 = vsel %vm3192_vm13, %v1808_v25, %v1812_v8 }
 0xa5f   : > { %1815 = vst [vmem:[%s691_s18] sm:$0xff] %v1813_v17 }
 0xa60   : > { %2286 = shalt.err (!%p2283_p10)
}
 0xa61   : > { %2026 = dma.vmem_to_hbm [thread:$0]  (%p2525_p13), %s1831_s28, 128, %s1833_s22, %s1817_s24  }
 0xa62 PF: > { %s3193_s1 = sld [smem:[#allocation15_spill]]  ;;  %p3195_p11 = scmp.ge.s32.totalorder %s2333_s21, 2 }
 0xa64   : > { %p2043_p0 = pnand %p3195_p11, %p2530_p4 }
 0xa66   : > { %p2044_p2 = pneg %p2043_p0 }
 0xa68   : > { %s1844_s19 = sand.u32 1, %s3193_s1  }
 0xa69   : > { %s1845_s18 = scalar_lea.sflag [#allocation4], %s1844_s19 }
 0xa6a   : > { %2316 = dma.done.wait (%p2044_p2), %s1845_s18, 128  }
 0xa6b   : > { %2318 = vsyncadd (%p2044_p2), %s1845_s18, 4294967168  ;;  %s3196_s21 = sld [smem:[#allocation17_spill]]  ;;  %s3199_s0 = smov %s2325_s30 }
 0xa6c   : > { %s3197_s5 = sld [smem:[#allocation16_spill]] }
 0xa6d   : > { %s3198_s20 = sld [smem:[#allocation18_spill]] }
 0xa71   : > { %p34_p6 = scmp.ge.s32.totalorder %s3196_s21, 4  }
 0xa72   : > { %s3200_s30 = smov %s3197_s5 }
 0xa73   :  { %36 = sbr.rel (!%p34_p6) target bundleno = 16 (0x10), region = 159 }
 0xa78   :  { %1851 = vsyncpa [#allocation3], 1 }
 0xa79   :  { %1853 = vsyncpa [#allocation3 + $0x1], 1 }
 0xa7a   :  { %1854 = vsyncpa [#allocation6], 1 }
 0xa7b   :  { %1855 = vsyncpa [#allocation9], 1 }
 0xa7c   :  { %1856 = vsyncpa [#allocation4], 1 }
 0xa7d   :  { %1858 = vsyncpa [#allocation4 + $0x1], 1 }

</bundles_post_ra>
